<compile_context>
chip_gen: v5e
topology: v5e:2x2
jax: 0.10.0
libtpu: 0.0.40
codegen_flags: <defaults>
</compile_context>

<pallas_src>
import jax
import jax.numpy as jnp
from jax import lax
from jax.experimental import pallas as pl
from jax.experimental.pallas import tpu as pltpu

EPS = 1e-5


# ---------------------------------------------------------------------------
# Tiling helper
# ---------------------------------------------------------------------------

def _pick_batch_tile(N, H):
    """Largest divisor of N with TB*H ~<= 256 so each grid step feeds the MXU an
    M of ~256 rows (fills v6e/v7x 256-row MXU; >=128 already fills v5e)."""
    target = max(1, -(-256 // H))        # ceil(256 / H)
    tb = 1
    for d in range(1, N + 1):
        if N % d == 0 and d <= target:
            tb = d
    return tb


# ---------------------------------------------------------------------------
# Kernels
# ---------------------------------------------------------------------------

def _make_conv_stats_kernel(TB, H, normalize_input):
    """Fused [optional prev-stage BN affine + ReLU] -> 3x3 conv -> batch-stat partials.

    One grid step == one TB-element batch tile.
      x_ref     : (TB, H, W*C_in)       activations (f32 stage 1 / bf16 stage 2)
      scale_ref : (1, W*C_in)           folded BN scale of the previous stage
      shift_ref : (1, W*C_in)           (both unused when normalize_input=False)
      w_ref     : (3, W*C_in, W*C_out)  banded conv weight, bf16
      y_ref     : (TB, H, W*C_out)      raw conv output (pre-BN)
      stats_ref : (1, 8, W*C_out)       rows 0/1 = per-lane [sum, sum_sq], rest 0
      xpad_ref  : (TB*(H+2), W*C_in)    bf16 scratch: H-padded operands (gap rows)
      acc_ref   : (TB*(H+2)-2, W*C_out) f32 matmul accumulator
    """
    S = H + 2                   # padded rows per batch element
    M = TB * S - 2              # matmul M dim (valid rows + inter-element gap rows)

    def kernel(x_ref, scale_ref, shift_ref, w_ref, y_ref, stats_ref,
               xpad_ref, acc_ref):
        wc_out = y_ref.shape[-1]

        # Scratch persists across grid steps: zero the halo/gap rows exactly once.
        @pl.when(pl.program_id(0) == 0)
        def _zero_halos():
            xpad_ref[...] = jnp.zeros(xpad_ref.shape, xpad_ref.dtype)

        # Previous stage's BatchNorm affine + ReLU fused here (f32 VPU math), then
        # a single f32 -> bf16 cast when writing the MXU-operand scratch.
        x = x_ref[...].astype(jnp.float32)                    # (TB, H, W*C_in)
        if normalize_input:
            x = jnp.maximum(x * scale_ref[...] + shift_ref[...], 0.0)
        xb = x.astype(jnp.bfloat16)
        for b in range(TB):                                   # tiny static loop
            xpad_ref[b * S + 1:b * S + 1 + H, :] = xb[b]

        # 3x3 conv == 3 banded matmuls (kx taps + W zero-padding folded into the
        # weight; ky taps are sublane-shifted views of the padded scratch).
        # acc row r corresponds to padded row r+1: output (b, h) == acc[b*S + h].
        acc_ref[...] = jnp.dot(xpad_ref[0:M, :], w_ref[0],
                               preferred_element_type=jnp.float32)
        acc_ref[...] += jnp.dot(xpad_ref[1:M + 1, :], w_ref[1],
                                preferred_element_type=jnp.float32)
        acc_ref[...] += jnp.dot(xpad_ref[2:M + 2, :], w_ref[2],
                                preferred_element_type=jnp.float32)

        # Emit the raw conv output and single-pass [sum, sum_sq] partials for the
        # BatchNorm batch stats (valid rows only; gap rows are ignored).
        tot = jnp.zeros((1, wc_out), jnp.float32)
        tot_sq = jnp.zeros((1, wc_out), jnp.float32)
        for b in range(TB):
            v = acc_ref[b * S:b * S + H, :]                   # (H, W*C_out) f32
            y_ref[b] = v.astype(y_ref.dtype)
            tot = tot + jnp.sum(v, axis=0, keepdims=True)
            tot_sq = tot_sq + jnp.sum(v * v, axis=0, keepdims=True)
        stats_ref[0] = jnp.concatenate(
            [tot, tot_sq, jnp.zeros((6, wc_out), jnp.float32)], axis=0)

    return kernel


# ---------------------------------------------------------------------------
# pallas_call wrapper
# ---------------------------------------------------------------------------

def _conv_stats(x, wbig, scale_in, shift_in, *, normalize_input, tb, out_dtype):
    """x:(N,H,W*C_in) -> (raw conv y:(N,H,W*C_out) out_dtype, stats:(G,8,W*C_out) f32)."""
    N, H, wc_in = x.shape
    wc_out = wbig.shape[-1]
    G = N // tb
    M = tb * (H + 2) - 2

    y_item = 2 if out_dtype == jnp.bfloat16 else 4
    flops = 2 * 3 * G * M * wc_in * wc_out
    bytes_accessed = (x.size * x.dtype.itemsize + wbig.size * 2 + 2 * wc_in * 4
                      + N * H * wc_out * y_item + G * 8 * wc_out * 4)

    return pl.pallas_call(
        _make_conv_stats_kernel(tb, H, normalize_input),
        out_shape=(jax.ShapeDtypeStruct((N, H, wc_out), out_dtype),
                   jax.ShapeDtypeStruct((G, 8, wc_out), jnp.float32)),
        grid=(G,),
        in_specs=[
            pl.BlockSpec((tb, H, wc_in), lambda n: (n, 0, 0)),
            pl.BlockSpec((1, wc_in), lambda n: (0, 0)),
            pl.BlockSpec((1, wc_in), lambda n: (0, 0)),
            # Grid-invariant weight block (index_map always (0,0,0)). For much
            # larger W*C use pl.Buffered(1) / a one-shot DMA into scratch and raise
            # vmem_limit_bytes (W^2 growth breaks v7x's 64 MiB VMEM first).
            pl.BlockSpec((3, wc_in, wc_out), lambda n: (0, 0, 0)),
        ],
        out_specs=(
            pl.BlockSpec((tb, H, wc_out), lambda n: (n, 0, 0)),
            pl.BlockSpec((1, 8, wc_out), lambda n: (n, 0, 0)),
        ),
        scratch_shapes=[
            pltpu.VMEM((tb * (H + 2), wc_in), jnp.bfloat16),   # H-padded bf16 operands
            pltpu.VMEM((M, wc_out), jnp.float32),              # f32 matmul accumulator
        ],
        compiler_params=pltpu.CompilerParams(
            dimension_semantics=("parallel",)),
        cost_estimate=pl.CostEstimate(flops=flops, transcendentals=0,
                                      bytes_accessed=bytes_accessed),
    )(x, scale_in, shift_in, wbig)


# ---------------------------------------------------------------------------
# Weight / BN-stat plumbing (tiny, plain XLA ops)
# ---------------------------------------------------------------------------

def _banded_weight(w_hwio, width):
    """(3, 3, C_in, C_out) HWIO -> (3, width*C_in, width*C_out) bf16.

    W_big[ky, w_in*C_in + ci, w_out*C_out + co] = w[ky, kx, ci, co] with
    w_in = w_out + kx - 1 (zero outside [0, width) -> W zero-padding folded in).
    """
    taps = []
    for ky in range(3):
        m = 0.0
        for kx in range(3):
            shift = jnp.eye(width, k=1 - kx, dtype=jnp.float32)
            m = m + jnp.kron(shift, w_hwio[ky, kx].astype(jnp.float32))
        taps.append(m)
    return jnp.stack(taps).astype(jnp.bfloat16)


def _bn_affine(stats, gamma, beta, count, width):
    """Per-lane partials -> folded per-channel BN scale/shift, tiled back to lanes."""
    C = gamma.shape[0]
    s = stats[:, 0, :].sum(axis=0).reshape(width, C).sum(axis=0)
    sq = stats[:, 1, :].sum(axis=0).reshape(width, C).sum(axis=0)
    mean = s / count
    var = jnp.maximum(sq / count - mean * mean, 0.0)      # biased batch variance
    scale_c = gamma * lax.rsqrt(var + EPS)
    shift_c = beta - mean * scale_c
    scale = jnp.tile(scale_c, width).reshape(1, width * C)
    shift = jnp.tile(shift_c, width).reshape(1, width * C)
    return scale, shift


def prepare_double_conv(params, width):
    """One-time (per weight update) preparation: build the banded conv weights here
    so the kron/eye construction is NOT on the per-forward path."""
    return dict(
        wbig1=_banded_weight(params["w1"], width),
        wbig2=_banded_weight(params["w2"], width),
        g1=params["g1"], be1=params["be1"],
        g2=params["g2"], be2=params["be2"],
    )


# ---------------------------------------------------------------------------
# DoubleConv forward
# ---------------------------------------------------------------------------

@jax.jit
def double_conv(x_nchw, prep):
    """(Conv3x3 p=1 -> BatchNorm2d(train) -> ReLU) x 2. NCHW in / NCHW out."""
    N, c_in, H, W = x_nchw.shape
    c2 = prep["g2"].shape[0]
    tb = _pick_batch_tile(N, H)

    # NCHW -> (N, H, W*C): lane-dense activation layout used throughout.
    x = jnp.transpose(x_nchw, (0, 2, 3, 1)).reshape(N, H, W * c_in)
    x = x.astype(jnp.float32)

    # Stage 1 conv (+ stat partials). Conv bias omitted: cancels under train-mode BN.
    # Intermediate y1 is stored bf16 (stats come from the f32 accumulator).
    dummy = jnp.zeros((1, W * c_in), jnp.float32)
    y1, st1 = _conv_stats(x, prep["wbig1"], dummy, dummy,
                          normalize_input=False, tb=tb, out_dtype=jnp.bfloat16)
    sc1, sh1 = _bn_affine(st1, prep["g1"], prep["be1"], N * H * W, W)

    # Stage 2: BN1 affine + ReLU fused into the conv kernel (+ stage-2 stat partials).
    y2, st2 = _conv_stats(y1, prep["wbig2"], sc1, sh1,
                          normalize_input=True, tb=tb, out_dtype=jnp.float32)
    sc2, sh2 = _bn_affine(st2, prep["g2"], prep["be2"], N * H * W, W)

    # Epilogue: BN2 affine + ReLU fused (by XLA) into the NHWC->NCHW transpose copy:
    # exactly one HBM read of y2 and one write of the output, no extra kernel launch.
    out = jnp.maximum(y2 * sc2 + sh2, 0.0)                # (N, H, W*c2)
    return jnp.transpose(out.reshape(N, H, W, c2), (0, 3, 1, 2))


# ---------------------------------------------------------------------------
# Params / reference / test harness
# ---------------------------------------------------------------------------

def init_double_conv_params(key, in_ch, out_ch):
    """PyTorch-default-ish init. Conv biases are kept only for the reference; the
    Pallas kernel drops them (exact cancellation under training-mode BatchNorm)."""
    k1, k2, k3, k4 = jax.random.split(key, 4)

    def conv_init(kw, kb, cin, cout):
        fan_in = cin * 3 * 3
        bound = 1.0 / jnp.sqrt(fan_in)
        w_oihw = jax.random.uniform(kw, (cout, cin, 3, 3), jnp.float32, -bound, bound)
        b = jax.random.uniform(kb, (cout,), jnp.float32, -bound, bound)
        return jnp.transpose(w_oihw, (2, 3, 1, 0)), b      # OIHW -> HWIO

    w1, b1 = conv_init(k1, k2, in_ch, out_ch)
    w2, b2 = conv_init(k3, k4, out_ch, out_ch)
    return dict(
        w1=w1, b1=b1, g1=jnp.ones((out_ch,), jnp.float32),
        be1=jnp.zeros((out_ch,), jnp.float32),
        w2=w2, b2=b2, g2=jnp.ones((out_ch,), jnp.float32),
        be2=jnp.zeros((out_ch,), jnp.float32),
    )


def _reference(x_nchw, params, matmul_dtype=jnp.float32):
    """Pure-JAX reference. matmul_dtype=bf16 mirrors the kernel's MXU operand precision."""
    x = jnp.transpose(x_nchw, (0, 2, 3, 1)).astype(jnp.float32)

    def stage(x, w, b, g, be):
        y = lax.conv_general_dilated(
            x.astype(matmul_dtype), w.astype(matmul_dtype),
            window_strides=(1, 1), padding=((1, 1), (1, 1)),
            dimension_numbers=("NHWC", "HWIO", "NHWC"),
            preferred_element_type=jnp.float32) + b
        mean = jnp.mean(y, axis=(0, 1, 2), keepdims=True)
        var = jnp.mean((y - mean) ** 2, axis=(0, 1, 2), keepdims=True)
        return jnp.maximum((y - mean) * (g * lax.rsqrt(var + EPS)) + be, 0.0)

    y = stage(x, params["w1"], params["b1"], params["g1"], params["be1"])
    y = stage(y, params["w2"], params["b2"], params["g2"], params["be2"])
    return jnp.transpose(y, (0, 3, 1, 2))


if __name__ == "__main__":
    key = jax.random.PRNGKey(0)
    kx, kp = jax.random.split(key)

    N, in_ch, out_ch, H, W = 2, 4, 8, 16, 16
    x = jax.random.normal(kx, (N, in_ch, H, W), jnp.float32)
    params = init_double_conv_params(kp, in_ch, out_ch)
    prep = prepare_double_conv(params, W)          # one-time banded-weight build

    out = jax.block_until_ready(double_conv(x, prep))
    assert out.shape == (N, out_ch, H, W), out.shape

    # Check vs a reference matching the kernel's bf16 MXU operand precision
    # (kernel additionally stores the stage-1 intermediate in bf16).
    ref_bf16 = jax.block_until_ready(_reference(x, params, jnp.bfloat16))
    err_bf16 = float(jnp.max(jnp.abs(out - ref_bf16)))
    assert jnp.allclose(out, ref_bf16, atol=5e-2, rtol=5e-2), err_bf16

    # Loose sanity check vs the full-f32 PyTorch-semantics reference.
    ref_f32 = jax.block_until_ready(_reference(x, params, jnp.float32))
    err_f32 = float(jnp.max(jnp.abs(out - ref_f32)))
    assert jnp.allclose(out, ref_f32, atol=1e-1, rtol=1e-1), err_f32

    print("KERNEL_OK")
</pallas_src>

<mosaic_0001>
module attributes {stable_mosaic.version = 11 : i64} {
  func.func @kernel(%arg0: i32, %arg1: memref<2x16x64xf32, #tpu.memory_space<vmem>>, %arg2: memref<1x64xf32, #tpu.memory_space<vmem>>, %arg3: memref<1x64xf32, #tpu.memory_space<vmem>>, %arg4: memref<3x64x128xbf16, #tpu.memory_space<vmem>>, %arg5: memref<2x16x128xbf16, #tpu.memory_space<vmem>>, %arg6: memref<1x8x128xf32, #tpu.memory_space<vmem>>, %arg7: memref<36x64xbf16, #tpu.memory_space<vmem>>, %arg8: memref<34x128xf32, #tpu.memory_space<vmem>>) attributes {dimension_semantics = [#tpu.dimension_semantics<parallel>], iteration_bounds = array<i64: 1>, scalar_prefetch = 0 : i64, scratch_operands = 2 : i64, tpu.core_type = #tpu.core_type<tc>, window_params = [{transform_indices = @transform_0, window_bounds = array<i64: 2, 16, 64>}, {pipeline_mode = #tpu.pipeline_mode<synchronous>, transform_indices = @transform_1, window_bounds = array<i64: 1, 64>}, {pipeline_mode = #tpu.pipeline_mode<synchronous>, transform_indices = @transform_2, window_bounds = array<i64: 1, 64>}, {pipeline_mode = #tpu.pipeline_mode<synchronous>, transform_indices = @transform_3, window_bounds = array<i64: 3, 64, 128>}, {transform_indices = @transform_4, window_bounds = array<i64: 2, 16, 128>}, {transform_indices = @transform_5, window_bounds = array<i64: 1, 8, 128>}]} {
    %c0_i32 = arith.constant 0 : i32
    %0 = arith.cmpi eq, %arg0, %c0_i32 : i32
    %1 = arith.extui %0 : i1 to i32
    %c0_i32_0 = arith.constant 0 : i32
    %2 = arith.cmpi ne, %1, %c0_i32_0 : i32
    scf.if %2 {
      %cst_50 = arith.constant 0.000000e+00 : bf16
      %61 = vector.broadcast %cst_50 : bf16 to vector<36x64xbf16>
      %c0_51 = arith.constant 0 : index
      %c0_52 = arith.constant 0 : index
      %62 = vector.load %arg7[%c0_51, %c0_52] : memref<36x64xbf16, #tpu.memory_space<vmem>>, vector<36x64xbf16>
      tpu.vector_store %arg7[%c0_51, %c0_52], %61 {strides = array<i32>} : memref<36x64xbf16, #tpu.memory_space<vmem>>, vector<36x64xbf16>,
    } else {
    }
    %c0 = arith.constant 0 : index
    %c0_1 = arith.constant 0 : index
    %c0_2 = arith.constant 0 : index
    %3 = vector.load %arg1[%c0, %c0_1, %c0_2] : memref<2x16x64xf32, #tpu.memory_space<vmem>>, vector<2x16x64xf32>
    %4 = arith.truncf %3 : vector<2x16x64xf32> to vector<2x16x64xbf16>
    %5 = vector.extract_strided_slice %4 {offsets = [0, 0, 0], sizes = [1, 16, 64], strides = [1, 1, 1]} : vector<2x16x64xbf16> to vector<1x16x64xbf16>
    %6 = vector.shape_cast %5 : vector<1x16x64xbf16> to vector<16x64xbf16>
    %c1 = arith.constant 1 : index
    %c0_3 = arith.constant 0 : index
    %7 = vector.load %arg7[%c1, %c0_3] : memref<36x64xbf16, #tpu.memory_space<vmem>>, vector<16x64xbf16>
    tpu.vector_store %arg7[%c1, %c0_3], %6 {strides = array<i32>} : memref<36x64xbf16, #tpu.memory_space<vmem>>, vector<16x64xbf16>,
    %8 = vector.extract_strided_slice %4 {offsets = [1, 0, 0], sizes = [1, 16, 64], strides = [1, 1, 1]} : vector<2x16x64xbf16> to vector<1x16x64xbf16>
    %9 = vector.shape_cast %8 : vector<1x16x64xbf16> to vector<16x64xbf16>
    %c19 = arith.constant 19 : index
    %c0_4 = arith.constant 0 : index
    %10 = vector.load %arg7[%c19, %c0_4] : memref<36x64xbf16, #tpu.memory_space<vmem>>, vector<16x64xbf16>
    tpu.vector_store %arg7[%c19, %c0_4], %9 {strides = array<i32>} : memref<36x64xbf16, #tpu.memory_space<vmem>>, vector<16x64xbf16>,
    %c0_5 = arith.constant 0 : index
    %c0_6 = arith.constant 0 : index
    %11 = vector.load %arg7[%c0_5, %c0_6] : memref<36x64xbf16, #tpu.memory_space<vmem>>, vector<34x64xbf16>
    %c0_7 = arith.constant 0 : index
    %c0_8 = arith.constant 0 : index
    %c0_9 = arith.constant 0 : index
    %12 = vector.load %arg4[%c0_7, %c0_8, %c0_9] : memref<3x64x128xbf16, #tpu.memory_space<vmem>>, vector<1x64x128xbf16>
    %13 = vector.shape_cast %12 : vector<1x64x128xbf16> to vector<64x128xbf16>
    %cst = arith.constant dense<0.000000e+00> : vector<34x128xf32>
    %14 = tpu.matmul %11, %13, %cst {dimension_numbers = #tpu.dot_dimension_numbers<[1], [0], [0], [1], [0, 0, 1, 1], [], []>} : vector<34x64xbf16>, vector<64x128xbf16>, vector<34x128xf32> -> vector<34x128xf32>
    %c0_10 = arith.constant 0 : index
    %c0_11 = arith.constant 0 : index
    %15 = vector.load %arg8[%c0_10, %c0_11] : memref<34x128xf32, #tpu.memory_space<vmem>>, vector<34x128xf32>
    tpu.vector_store %arg8[%c0_10, %c0_11], %14 {strides = array<i32>} : memref<34x128xf32, #tpu.memory_space<vmem>>, vector<34x128xf32>,
    %c0_12 = arith.constant 0 : index
    %c0_13 = arith.constant 0 : index
    %16 = vector.load %arg8[%c0_12, %c0_13] : memref<34x128xf32, #tpu.memory_space<vmem>>, vector<34x128xf32>
    %c1_14 = arith.constant 1 : index
    %c0_15 = arith.constant 0 : index
    %17 = vector.load %arg7[%c1_14, %c0_15] : memref<36x64xbf16, #tpu.memory_space<vmem>>, vector<34x64xbf16>
    %c1_16 = arith.constant 1 : index
    %c0_17 = arith.constant 0 : index
    %c0_18 = arith.constant 0 : index
    %18 = vector.load %arg4[%c1_16, %c0_17, %c0_18] : memref<3x64x128xbf16, #tpu.memory_space<vmem>>, vector<1x64x128xbf16>
    %19 = vector.shape_cast %18 : vector<1x64x128xbf16> to vector<64x128xbf16>
    %cst_19 = arith.constant dense<0.000000e+00> : vector<34x128xf32>
    %20 = tpu.matmul %17, %19, %cst_19 {dimension_numbers = #tpu.dot_dimension_numbers<[1], [0], [0], [1], [0, 0, 1, 1], [], []>} : vector<34x64xbf16>, vector<64x128xbf16>, vector<34x128xf32> -> vector<34x128xf32>
    %21 = arith.addf %16, %20 : vector<34x128xf32>
    %c0_20 = arith.constant 0 : index
    %c0_21 = arith.constant 0 : index
    %22 = vector.load %arg8[%c0_20, %c0_21] : memref<34x128xf32, #tpu.memory_space<vmem>>, vector<34x128xf32>
    tpu.vector_store %arg8[%c0_20, %c0_21], %21 {strides = array<i32>} : memref<34x128xf32, #tpu.memory_space<vmem>>, vector<34x128xf32>,
    %c0_22 = arith.constant 0 : index
    %c0_23 = arith.constant 0 : index
    %23 = vector.load %arg8[%c0_22, %c0_23] : memref<34x128xf32, #tpu.memory_space<vmem>>, vector<34x128xf32>
    %c2 = arith.constant 2 : index
    %c0_24 = arith.constant 0 : index
    %24 = vector.load %arg7[%c2, %c0_24] : memref<36x64xbf16, #tpu.memory_space<vmem>>, vector<34x64xbf16>
    %c2_25 = arith.constant 2 : index
    %c0_26 = arith.constant 0 : index
    %c0_27 = arith.constant 0 : index
    %25 = vector.load %arg4[%c2_25, %c0_26, %c0_27] : memref<3x64x128xbf16, #tpu.memory_space<vmem>>, vector<1x64x128xbf16>
    %26 = vector.shape_cast %25 : vector<1x64x128xbf16> to vector<64x128xbf16>
    %cst_28 = arith.constant dense<0.000000e+00> : vector<34x128xf32>
    %27 = tpu.matmul %24, %26, %cst_28 {dimension_numbers = #tpu.dot_dimension_numbers<[1], [0], [0], [1], [0, 0, 1, 1], [], []>} : vector<34x64xbf16>, vector<64x128xbf16>, vector<34x128xf32> -> vector<34x128xf32>
    %28 = arith.addf %23, %27 : vector<34x128xf32>
    %c0_29 = arith.constant 0 : index
    %c0_30 = arith.constant 0 : index
    %29 = vector.load %arg8[%c0_29, %c0_30] : memref<34x128xf32, #tpu.memory_space<vmem>>, vector<34x128xf32>
    tpu.vector_store %arg8[%c0_29, %c0_30], %28 {strides = array<i32>} : memref<34x128xf32, #tpu.memory_space<vmem>>, vector<34x128xf32>,
    %cst_31 = arith.constant 0.000000e+00 : f32
    %30 = vector.broadcast %cst_31 : f32 to vector<1x128xf32>
    %cst_32 = arith.constant 0.000000e+00 : f32
    %31 = vector.broadcast %cst_32 : f32 to vector<1x128xf32>
    %c0_33 = arith.constant 0 : index
    %c0_34 = arith.constant 0 : index
    %32 = vector.load %arg8[%c0_33, %c0_34] : memref<34x128xf32, #tpu.memory_space<vmem>>, vector<16x128xf32>
    %33 = arith.truncf %32 : vector<16x128xf32> to vector<16x128xbf16>
    %c0_35 = arith.constant 0 : index
    %c0_36 = arith.constant 0 : index
    %c0_37 = arith.constant 0 : index
    %34 = vector.load %arg5[%c0_35, %c0_36, %c0_37] : memref<2x16x128xbf16, #tpu.memory_space<vmem>>, vector<1x16x128xbf16>
    %35 = vector.shape_cast %34 : vector<1x16x128xbf16> to vector<16x128xbf16>
    %36 = vector.shape_cast %33 : vector<16x128xbf16> to vector<1x16x128xbf16>
    tpu.vector_store %arg5[%c0_35, %c0_36, %c0_37], %36 {strides = array<i32>} : memref<2x16x128xbf16, #tpu.memory_space<vmem>>, vector<1x16x128xbf16>,
    %cst_38 = arith.constant dense<0.000000e+00> : vector<128xf32>
    %37 = vector.multi_reduction <add>, %32, %cst_38 [0] : vector<16x128xf32> to vector<128xf32>
    %38 = vector.shape_cast %37 : vector<128xf32> to vector<1x128xf32>
    %39 = arith.addf %30, %38 : vector<1x128xf32>
    %40 = arith.mulf %32, %32 : vector<16x128xf32>
    %cst_39 = arith.constant dense<0.000000e+00> : vector<128xf32>
    %41 = vector.multi_reduction <add>, %40, %cst_39 [0] : vector<16x128xf32> to vector<128xf32>
    %42 = vector.shape_cast %41 : vector<128xf32> to vector<1x128xf32>
    %43 = arith.addf %31, %42 : vector<1x128xf32>
    %c18 = arith.constant 18 : index
    %c0_40 = arith.constant 0 : index
    %44 = vector.load %arg8[%c18, %c0_40] : memref<34x128xf32, #tpu.memory_space<vmem>>, vector<16x128xf32>
    %45 = arith.truncf %44 : vector<16x128xf32> to vector<16x128xbf16>
    %c1_41 = arith.constant 1 : index
    %c0_42 = arith.constant 0 : index
    %c0_43 = arith.constant 0 : index
    %46 = vector.load %arg5[%c1_41, %c0_42, %c0_43] : memref<2x16x128xbf16, #tpu.memory_space<vmem>>, vector<1x16x128xbf16>
    %47 = vector.shape_cast %46 : vector<1x16x128xbf16> to vector<16x128xbf16>
    %48 = vector.shape_cast %45 : vector<16x128xbf16> to vector<1x16x128xbf16>
    tpu.vector_store %arg5[%c1_41, %c0_42, %c0_43], %48 {strides = array<i32>} : memref<2x16x128xbf16, #tpu.memory_space<vmem>>, vector<1x16x128xbf16>,
    %cst_44 = arith.constant dense<0.000000e+00> : vector<128xf32>
    %49 = vector.multi_reduction <add>, %44, %cst_44 [0] : vector<16x128xf32> to vector<128xf32>
    %50 = vector.shape_cast %49 : vector<128xf32> to vector<1x128xf32>
    %51 = arith.addf %39, %50 : vector<1x128xf32>
    %52 = arith.mulf %44, %44 : vector<16x128xf32>
    %cst_45 = arith.constant dense<0.000000e+00> : vector<128xf32>
    %53 = vector.multi_reduction <add>, %52, %cst_45 [0] : vector<16x128xf32> to vector<128xf32>
    %54 = vector.shape_cast %53 : vector<128xf32> to vector<1x128xf32>
    %55 = arith.addf %43, %54 : vector<1x128xf32>
    %cst_46 = arith.constant 0.000000e+00 : f32
    %56 = vector.broadcast %cst_46 : f32 to vector<6x128xf32>
    %57 = tpu.concatenate %51, %55, %56 in 0 : vector<1x128xf32>, vector<1x128xf32>, vector<6x128xf32> -> vector<8x128xf32>
    %c0_47 = arith.constant 0 : index
    %c0_48 = arith.constant 0 : index
    %c0_49 = arith.constant 0 : index
    %58 = vector.load %arg6[%c0_47, %c0_48, %c0_49] : memref<1x8x128xf32, #tpu.memory_space<vmem>>, vector<1x8x128xf32>
    %59 = vector.shape_cast %58 : vector<1x8x128xf32> to vector<8x128xf32>
    %60 = vector.shape_cast %57 : vector<8x128xf32> to vector<1x8x128xf32>
    tpu.vector_store %arg6[%c0_47, %c0_48, %c0_49], %60 {strides = array<i32>} : memref<1x8x128xf32, #tpu.memory_space<vmem>>, vector<1x8x128xf32>,
    return
  }
  func.func @transform_0(%arg0: i32) -> (i32, i32, i32) {
    %c0_i32 = arith.constant 0 : i32
    %c0_i32_0 = arith.constant 0 : i32
    %c0_i32_1 = arith.constant 0 : i32
    return %arg0, %c0_i32, %c0_i32_0 : i32, i32, i32
  }
  func.func @transform_1(%arg0: i32) -> (i32, i32) {
    %c0_i32 = arith.constant 0 : i32
    %c0_i32_0 = arith.constant 0 : i32
    %c0_i32_1 = arith.constant 0 : i32
    return %c0_i32, %c0_i32_0 : i32, i32
  }
  func.func @transform_2(%arg0: i32) -> (i32, i32) {
    %c0_i32 = arith.constant 0 : i32
    %c0_i32_0 = arith.constant 0 : i32
    %c0_i32_1 = arith.constant 0 : i32
    return %c0_i32, %c0_i32_0 : i32, i32
  }
  func.func @transform_3(%arg0: i32) -> (i32, i32, i32) {
    %c0_i32 = arith.constant 0 : i32
    %c0_i32_0 = arith.constant 0 : i32
    %c0_i32_1 = arith.constant 0 : i32
    %c0_i32_2 = arith.constant 0 : i32
    return %c0_i32, %c0_i32_0, %c0_i32_1 : i32, i32, i32
  }
  func.func @transform_4(%arg0: i32) -> (i32, i32, i32) {
    %c0_i32 = arith.constant 0 : i32
    %c0_i32_0 = arith.constant 0 : i32
    %c0_i32_1 = arith.constant 0 : i32
    return %arg0, %c0_i32, %c0_i32_0 : i32, i32, i32
  }
  func.func @transform_5(%arg0: i32) -> (i32, i32, i32) {
    %c0_i32 = arith.constant 0 : i32
    %c0_i32_0 = arith.constant 0 : i32
    %c0_i32_1 = arith.constant 0 : i32
    return %arg0, %c0_i32, %c0_i32_0 : i32, i32, i32
  }
}

module attributes {stable_mosaic.version = 11 : i64} {
  func.func @kernel(%arg0: i32, %arg1: memref<2x16x128xbf16, #tpu.memory_space<vmem>>, %arg2: memref<1x128xf32, #tpu.memory_space<vmem>>, %arg3: memref<1x128xf32, #tpu.memory_space<vmem>>, %arg4: memref<3x128x128xbf16, #tpu.memory_space<vmem>>, %arg5: memref<2x16x128xf32, #tpu.memory_space<vmem>>, %arg6: memref<1x8x128xf32, #tpu.memory_space<vmem>>, %arg7: memref<36x128xbf16, #tpu.memory_space<vmem>>, %arg8: memref<34x128xf32, #tpu.memory_space<vmem>>) attributes {dimension_semantics = [#tpu.dimension_semantics<parallel>], iteration_bounds = array<i64: 1>, scalar_prefetch = 0 : i64, scratch_operands = 2 : i64, tpu.core_type = #tpu.core_type<tc>, window_params = [{transform_indices = @transform_0, window_bounds = array<i64: 2, 16, 128>}, {pipeline_mode = #tpu.pipeline_mode<synchronous>, transform_indices = @transform_1, window_bounds = array<i64: 1, 128>}, {pipeline_mode = #tpu.pipeline_mode<synchronous>, transform_indices = @transform_2, window_bounds = array<i64: 1, 128>}, {pipeline_mode = #tpu.pipeline_mode<synchronous>, transform_indices = @transform_3, window_bounds = array<i64: 3, 128, 128>}, {transform_indices = @transform_4, window_bounds = array<i64: 2, 16, 128>}, {transform_indices = @transform_5, window_bounds = array<i64: 1, 8, 128>}]} {
    %c0_i32 = arith.constant 0 : i32
    %0 = arith.cmpi eq, %arg0, %c0_i32 : i32
    %1 = arith.extui %0 : i1 to i32
    %c0_i32_0 = arith.constant 0 : i32
    %2 = arith.cmpi ne, %1, %c0_i32_0 : i32
    scf.if %2 {
      %cst_55 = arith.constant 0.000000e+00 : bf16
      %70 = vector.broadcast %cst_55 : bf16 to vector<36x128xbf16>
      %c0_56 = arith.constant 0 : index
      %c0_57 = arith.constant 0 : index
      %71 = vector.load %arg7[%c0_56, %c0_57] : memref<36x128xbf16, #tpu.memory_space<vmem>>, vector<36x128xbf16>
      tpu.vector_store %arg7[%c0_56, %c0_57], %70 {strides = array<i32>} : memref<36x128xbf16, #tpu.memory_space<vmem>>, vector<36x128xbf16>,
    } else {
    }
    %c0 = arith.constant 0 : index
    %c0_1 = arith.constant 0 : index
    %c0_2 = arith.constant 0 : index
    %3 = vector.load %arg1[%c0, %c0_1, %c0_2] : memref<2x16x128xbf16, #tpu.memory_space<vmem>>, vector<2x16x128xbf16>
    %4 = arith.extf %3 : vector<2x16x128xbf16> to vector<2x16x128xf32>
    %c0_3 = arith.constant 0 : index
    %c0_4 = arith.constant 0 : index
    %5 = vector.load %arg2[%c0_3, %c0_4] : memref<1x128xf32, #tpu.memory_space<vmem>>, vector<1x128xf32>
    %6 = vector.shape_cast %5 : vector<1x128xf32> to vector<1x1x128xf32>
    %7 = vector.broadcast %6 : vector<1x1x128xf32> to vector<2x16x128xf32>
    %8 = arith.mulf %4, %7 : vector<2x16x128xf32>
    %c0_5 = arith.constant 0 : index
    %c0_6 = arith.constant 0 : index
    %9 = vector.load %arg3[%c0_5, %c0_6] : memref<1x128xf32, #tpu.memory_space<vmem>>, vector<1x128xf32>
    %10 = vector.shape_cast %9 : vector<1x128xf32> to vector<1x1x128xf32>
    %11 = vector.broadcast %10 : vector<1x1x128xf32> to vector<2x16x128xf32>
    %12 = arith.addf %8, %11 : vector<2x16x128xf32>
    %cst = arith.constant 0.000000e+00 : f32
    %13 = vector.broadcast %cst : f32 to vector<2x16x128xf32>
    %14 = arith.maximumf %12, %13 : vector<2x16x128xf32>
    %15 = arith.truncf %14 : vector<2x16x128xf32> to vector<2x16x128xbf16>
    %16 = vector.extract_strided_slice %15 {offsets = [0, 0, 0], sizes = [1, 16, 128], strides = [1, 1, 1]} : vector<2x16x128xbf16> to vector<1x16x128xbf16>
    %17 = vector.shape_cast %16 : vector<1x16x128xbf16> to vector<16x128xbf16>
    %c1 = arith.constant 1 : index
    %c0_7 = arith.constant 0 : index
    %18 = vector.load %arg7[%c1, %c0_7] : memref<36x128xbf16, #tpu.memory_space<vmem>>, vector<16x128xbf16>
    tpu.vector_store %arg7[%c1, %c0_7], %17 {strides = array<i32>} : memref<36x128xbf16, #tpu.memory_space<vmem>>, vector<16x128xbf16>,
    %19 = vector.extract_strided_slice %15 {offsets = [1, 0, 0], sizes = [1, 16, 128], strides = [1, 1, 1]} : vector<2x16x128xbf16> to vector<1x16x128xbf16>
    %20 = vector.shape_cast %19 : vector<1x16x128xbf16> to vector<16x128xbf16>
    %c19 = arith.constant 19 : index
    %c0_8 = arith.constant 0 : index
    %21 = vector.load %arg7[%c19, %c0_8] : memref<36x128xbf16, #tpu.memory_space<vmem>>, vector<16x128xbf16>
    tpu.vector_store %arg7[%c19, %c0_8], %20 {strides = array<i32>} : memref<36x128xbf16, #tpu.memory_space<vmem>>, vector<16x128xbf16>,
    %c0_9 = arith.constant 0 : index
    %c0_10 = arith.constant 0 : index
    %22 = vector.load %arg7[%c0_9, %c0_10] : memref<36x128xbf16, #tpu.memory_space<vmem>>, vector<34x128xbf16>
    %c0_11 = arith.constant 0 : index
    %c0_12 = arith.constant 0 : index
    %c0_13 = arith.constant 0 : index
    %23 = vector.load %arg4[%c0_11, %c0_12, %c0_13] : memref<3x128x128xbf16, #tpu.memory_space<vmem>>, vector<1x128x128xbf16>
    %24 = vector.shape_cast %23 : vector<1x128x128xbf16> to vector<128x128xbf16>
    %cst_14 = arith.constant dense<0.000000e+00> : vector<34x128xf32>
    %25 = tpu.matmul %22, %24, %cst_14 {dimension_numbers = #tpu.dot_dimension_numbers<[1], [0], [0], [1], [0, 0, 1, 1], [], []>} : vector<34x128xbf16>, vector<128x128xbf16>, vector<34x128xf32> -> vector<34x128xf32>
    %c0_15 = arith.constant 0 : index
    %c0_16 = arith.constant 0 : index
    %26 = vector.load %arg8[%c0_15, %c0_16] : memref<34x128xf32, #tpu.memory_space<vmem>>, vector<34x128xf32>
    tpu.vector_store %arg8[%c0_15, %c0_16], %25 {strides = array<i32>} : memref<34x128xf32, #tpu.memory_space<vmem>>, vector<34x128xf32>,
    %c0_17 = arith.constant 0 : index
    %c0_18 = arith.constant 0 : index
    %27 = vector.load %arg8[%c0_17, %c0_18] : memref<34x128xf32, #tpu.memory_space<vmem>>, vector<34x128xf32>
    %c1_19 = arith.constant 1 : index
    %c0_20 = arith.constant 0 : index
    %28 = vector.load %arg7[%c1_19, %c0_20] : memref<36x128xbf16, #tpu.memory_space<vmem>>, vector<34x128xbf16>
    %c1_21 = arith.constant 1 : index
    %c0_22 = arith.constant 0 : index
    %c0_23 = arith.constant 0 : index
    %29 = vector.load %arg4[%c1_21, %c0_22, %c0_23] : memref<3x128x128xbf16, #tpu.memory_space<vmem>>, vector<1x128x128xbf16>
    %30 = vector.shape_cast %29 : vector<1x128x128xbf16> to vector<128x128xbf16>
    %cst_24 = arith.constant dense<0.000000e+00> : vector<34x128xf32>
    %31 = tpu.matmul %28, %30, %cst_24 {dimension_numbers = #tpu.dot_dimension_numbers<[1], [0], [0], [1], [0, 0, 1, 1], [], []>} : vector<34x128xbf16>, vector<128x128xbf16>, vector<34x128xf32> -> vector<34x128xf32>
    %32 = arith.addf %27, %31 : vector<34x128xf32>
    %c0_25 = arith.constant 0 : index
    %c0_26 = arith.constant 0 : index
    %33 = vector.load %arg8[%c0_25, %c0_26] : memref<34x128xf32, #tpu.memory_space<vmem>>, vector<34x128xf32>
    tpu.vector_store %arg8[%c0_25, %c0_26], %32 {strides = array<i32>} : memref<34x128xf32, #tpu.memory_space<vmem>>, vector<34x128xf32>,
    %c0_27 = arith.constant 0 : index
    %c0_28 = arith.constant 0 : index
    %34 = vector.load %arg8[%c0_27, %c0_28] : memref<34x128xf32, #tpu.memory_space<vmem>>, vector<34x128xf32>
    %c2 = arith.constant 2 : index
    %c0_29 = arith.constant 0 : index
    %35 = vector.load %arg7[%c2, %c0_29] : memref<36x128xbf16, #tpu.memory_space<vmem>>, vector<34x128xbf16>
    %c2_30 = arith.constant 2 : index
    %c0_31 = arith.constant 0 : index
    %c0_32 = arith.constant 0 : index
    %36 = vector.load %arg4[%c2_30, %c0_31, %c0_32] : memref<3x128x128xbf16, #tpu.memory_space<vmem>>, vector<1x128x128xbf16>
    %37 = vector.shape_cast %36 : vector<1x128x128xbf16> to vector<128x128xbf16>
    %cst_33 = arith.constant dense<0.000000e+00> : vector<34x128xf32>
    %38 = tpu.matmul %35, %37, %cst_33 {dimension_numbers = #tpu.dot_dimension_numbers<[1], [0], [0], [1], [0, 0, 1, 1], [], []>} : vector<34x128xbf16>, vector<128x128xbf16>, vector<34x128xf32> -> vector<34x128xf32>
    %39 = arith.addf %34, %38 : vector<34x128xf32>
    %c0_34 = arith.constant 0 : index
    %c0_35 = arith.constant 0 : index
    %40 = vector.load %arg8[%c0_34, %c0_35] : memref<34x128xf32, #tpu.memory_space<vmem>>, vector<34x128xf32>
    tpu.vector_store %arg8[%c0_34, %c0_35], %39 {strides = array<i32>} : memref<34x128xf32, #tpu.memory_space<vmem>>, vector<34x128xf32>,
    %cst_36 = arith.constant 0.000000e+00 : f32
    %41 = vector.broadcast %cst_36 : f32 to vector<1x128xf32>
    %cst_37 = arith.constant 0.000000e+00 : f32
    %42 = vector.broadcast %cst_37 : f32 to vector<1x128xf32>
    %c0_38 = arith.constant 0 : index
    %c0_39 = arith.constant 0 : index
    %43 = vector.load %arg8[%c0_38, %c0_39] : memref<34x128xf32, #tpu.memory_space<vmem>>, vector<16x128xf32>
    %c0_40 = arith.constant 0 : index
    %c0_41 = arith.constant 0 : index
    %c0_42 = arith.constant 0 : index
    %44 = vector.load %arg5[%c0_40, %c0_41, %c0_42] : memref<2x16x128xf32, #tpu.memory_space<vmem>>, vector<1x16x128xf32>
    %45 = vector.shape_cast %44 : vector<1x16x128xf32> to vector<16x128xf32>
    %46 = vector.shape_cast %43 : vector<16x128xf32> to vector<1x16x128xf32>
    tpu.vector_store %arg5[%c0_40, %c0_41, %c0_42], %46 {strides = array<i32>} : memref<2x16x128xf32, #tpu.memory_space<vmem>>, vector<1x16x128xf32>,
    %cst_43 = arith.constant dense<0.000000e+00> : vector<128xf32>
    %47 = vector.multi_reduction <add>, %43, %cst_43 [0] : vector<16x128xf32> to vector<128xf32>
    %48 = vector.shape_cast %47 : vector<128xf32> to vector<1x128xf32>
    %49 = arith.addf %41, %48 : vector<1x128xf32>
    %50 = arith.mulf %43, %43 : vector<16x128xf32>
    %cst_44 = arith.constant dense<0.000000e+00> : vector<128xf32>
    %51 = vector.multi_reduction <add>, %50, %cst_44 [0] : vector<16x128xf32> to vector<128xf32>
    %52 = vector.shape_cast %51 : vector<128xf32> to vector<1x128xf32>
    %53 = arith.addf %42, %52 : vector<1x128xf32>
    %c18 = arith.constant 18 : index
    %c0_45 = arith.constant 0 : index
    %54 = vector.load %arg8[%c18, %c0_45] : memref<34x128xf32, #tpu.memory_space<vmem>>, vector<16x128xf32>
    %c1_46 = arith.constant 1 : index
    %c0_47 = arith.constant 0 : index
    %c0_48 = arith.constant 0 : index
    %55 = vector.load %arg5[%c1_46, %c0_47, %c0_48] : memref<2x16x128xf32, #tpu.memory_space<vmem>>, vector<1x16x128xf32>
    %56 = vector.shape_cast %55 : vector<1x16x128xf32> to vector<16x128xf32>
    %57 = vector.shape_cast %54 : vector<16x128xf32> to vector<1x16x128xf32>
    tpu.vector_store %arg5[%c1_46, %c0_47, %c0_48], %57 {strides = array<i32>} : memref<2x16x128xf32, #tpu.memory_space<vmem>>, vector<1x16x128xf32>,
    %cst_49 = arith.constant dense<0.000000e+00> : vector<128xf32>
    %58 = vector.multi_reduction <add>, %54, %cst_49 [0] : vector<16x128xf32> to vector<128xf32>
    %59 = vector.shape_cast %58 : vector<128xf32> to vector<1x128xf32>
    %60 = arith.addf %49, %59 : vector<1x128xf32>
    %61 = arith.mulf %54, %54 : vector<16x128xf32>
    %cst_50 = arith.constant dense<0.000000e+00> : vector<128xf32>
    %62 = vector.multi_reduction <add>, %61, %cst_50 [0] : vector<16x128xf32> to vector<128xf32>
    %63 = vector.shape_cast %62 : vector<128xf32> to vector<1x128xf32>
    %64 = arith.addf %53, %63 : vector<1x128xf32>
    %cst_51 = arith.constant 0.000000e+00 : f32
    %65 = vector.broadcast %cst_51 : f32 to vector<6x128xf32>
    %66 = tpu.concatenate %60, %64, %65 in 0 : vector<1x128xf32>, vector<1x128xf32>, vector<6x128xf32> -> vector<8x128xf32>
    %c0_52 = arith.constant 0 : index
    %c0_53 = arith.constant 0 : index
    %c0_54 = arith.constant 0 : index
    %67 = vector.load %arg6[%c0_52, %c0_53, %c0_54] : memref<1x8x128xf32, #tpu.memory_space<vmem>>, vector<1x8x128xf32>
    %68 = vector.shape_cast %67 : vector<1x8x128xf32> to vector<8x128xf32>
    %69 = vector.shape_cast %66 : vector<8x128xf32> to vector<1x8x128xf32>
    tpu.vector_store %arg6[%c0_52, %c0_53, %c0_54], %69 {strides = array<i32>} : memref<1x8x128xf32, #tpu.memory_space<vmem>>, vector<1x8x128xf32>,
    return
  }
  func.func @transform_0(%arg0: i32) -> (i32, i32, i32) {
    %c0_i32 = arith.constant 0 : i32
    %c0_i32_0 = arith.constant 0 : i32
    %c0_i32_1 = arith.constant 0 : i32
    return %arg0, %c0_i32, %c0_i32_0 : i32, i32, i32
  }
  func.func @transform_1(%arg0: i32) -> (i32, i32) {
    %c0_i32 = arith.constant 0 : i32
    %c0_i32_0 = arith.constant 0 : i32
    %c0_i32_1 = arith.constant 0 : i32
    return %c0_i32, %c0_i32_0 : i32, i32
  }
  func.func @transform_2(%arg0: i32) -> (i32, i32) {
    %c0_i32 = arith.constant 0 : i32
    %c0_i32_0 = arith.constant 0 : i32
    %c0_i32_1 = arith.constant 0 : i32
    return %c0_i32, %c0_i32_0 : i32, i32
  }
  func.func @transform_3(%arg0: i32) -> (i32, i32, i32) {
    %c0_i32 = arith.constant 0 : i32
    %c0_i32_0 = arith.constant 0 : i32
    %c0_i32_1 = arith.constant 0 : i32
    %c0_i32_2 = arith.constant 0 : i32
    return %c0_i32, %c0_i32_0, %c0_i32_1 : i32, i32, i32
  }
  func.func @transform_4(%arg0: i32) -> (i32, i32, i32) {
    %c0_i32 = arith.constant 0 : i32
    %c0_i32_0 = arith.constant 0 : i32
    %c0_i32_1 = arith.constant 0 : i32
    return %arg0, %c0_i32, %c0_i32_0 : i32, i32, i32
  }
  func.func @transform_5(%arg0: i32) -> (i32, i32, i32) {
    %c0_i32 = arith.constant 0 : i32
    %c0_i32_0 = arith.constant 0 : i32
    %c0_i32_1 = arith.constant 0 : i32
    return %arg0, %c0_i32, %c0_i32_0 : i32, i32, i32
  }
}

</mosaic_0001>

<bundles_post_ra>
// kernel: tile.28
= control target key start
LH: loop header
LB: loop body
LE: loop exit
PB: predicated region body
PF: predicated region fallthrough
CT: control target
= control target key end

     0   :  { %s28_s0 = inlined_call_operand.vmem [shape: f32[8], index: 0, kind: input, shape index: {}]   ;;  %s29_s1 = inlined_call_operand.vmem [shape: f32[16,8], index: 1, kind: output, shape index: {}]  }
   0x1   :  { %v4_v0 = vld [vmem:[%s28_s0] ss:$0 sm:$0xff] }
   0x2   :  { %5 = vst [vmem:[%s29_s1] sm:$0xff] %v4_v0 }
   0x3   :  { %8 = vst [vmem:[%s29_s1 + $0x8] sm:$0xff] %v4_v0 }

// kernel: tile.29
= control target key start
LH: loop header
LB: loop body
LE: loop exit
PB: predicated region body
PF: predicated region fallthrough
CT: control target
= control target key end

     0   :  { %s131_s10 = smov 120   ;;  %s132_s11 = smov 104   ;;  %vm3_vm0 = vcmask 64512   ;;  %vm9_vm1 = vcmask 1048512   ;;  %vm15_vm2 = vcmask 982912   ;;  %vm21_vm3 = vcmask 917312   ;;  %s207_s0 = inlined_call_operand.vmem [shape: f32[16,8], index: 0, kind: input, shape index: {}]   ;;  %s208_s1 = inlined_call_operand.vmem [shape: f32[1,128], index: 1, kind: output, shape index: {}]  }
   0x1   :  { %v101_v0 = vld [vmem:[%s207_s0 + $0xf] sm:$0x1]   ;;  %v103_v1 = vld [vmem:[%s207_s0 + $0xd] sm:$0x1]   ;;  %v105_v2 = vld [vmem:[%s207_s0 + $0xb] sm:$0x1]  }
   0x2   :  { %7 = vrot.lane.b32.xlu0 %v101_v0, %s131_s10  ;;  %19 = vrot.lane.b32.xlu1 %v103_v1, %s132_s11  ;;  %s133_s14 = smov 88   ;;  %v102_v3 = vld [vmem:[%s207_s0 + $0xe] sm:$0x1]   ;;  %v104_v4 = vld [vmem:[%s207_s0 + $0xc] sm:$0x1]   ;;  %s134_s19 = smov 112  }
   0x3   :  { %31 = vrot.lane.b32.xlu2 %v105_v2, %s133_s14  ;;  %s135_s20 = smov 96   ;;  %v106_v5 = vld [vmem:[%s207_s0 + $0xa] sm:$0x1]   ;;  %s136_s23 = smov 80   ;;  %v107_v6 = vld [vmem:[%s207_s0 + $0x9] sm:$0x1]  }
   0x4   :  { %v108_v7 = vld [vmem:[%s207_s0 + $0x8] sm:$0x1]   ;;  %s137_s28 = smov 72   ;;  %s138_s29 = smov 64   ;;  %v109_v8 = vld [vmem:[%s207_s0 + $0x7] sm:$0x1]  }
   0x5   :  { %s139_s3 = smov 56   ;;  %v110_v9 = vld [vmem:[%s207_s0 + $0x6] sm:$0x1]   ;;  %v111_v10 = vld [vmem:[%s207_s0 + $0x5] sm:$0x1]   ;;  %s140_s8 = smov 48  }
   0x6   :  { %s141_s9 = smov 40   ;;  %v112_v11 = vld [vmem:[%s207_s0 + $0x4] sm:$0x1]   ;;  %s142_s12 = smov 32   ;;  %v113_v12 = vld [vmem:[%s207_s0 + $0x3] sm:$0x1]  }
   0x7   :  { %v114_v13 = vld [vmem:[%s207_s0 + $0x2] sm:$0x1]   ;;  %s143_s17 = smov 24   ;;  %s144_s18 = smov 16   ;;  %v115_v14 = vld [vmem:[%s207_s0 + $0x1] sm:$0x1]  }
   0x8   :  { %s145_s21 = smov 8   ;;  %v2_v15 = vld [vmem:[%s207_s0] sm:$0x1]   ;;  %vm27_vm4 = vcmask 851712   ;;  %vm33_vm5 = vcmask 786112   ;;  %vm39_vm6 = vcmask 720512  }
   0x9   :  { %4 = vst.msk [vmem:[#allocation0] sm:$0x1] %vm3_vm0, %v2_v15   ;;  %vm45_vm7 = vcmask 654912   ;;  %vm51_vm8 = vcmask 589312   ;;  %vm57_vm9 = vcmask 523712   ;;  %vm63_vm10 = vcmask 458112  }
   0xa   :  { %13 = vrot.lane.b32.xlu0 %v102_v3, %s134_s19  ;;  %25 = vrot.lane.b32.xlu1 %v104_v4, %s135_s20  ;;  %vm69_vm11 = vcmask 392512   ;;  %vm75_vm12 = vcmask 326912   ;;  %vm81_vm13 = vcmask 261312   ;;  %vm87_vm14 = vcmask 195712  }
   0xb   :  { %37 = vrot.lane.b32.xlu2 %v106_v5, %s136_s23  ;;  %vm93_vm15 = vcmask 130112  }
  0x12   :  { %43 = vrot.lane.b32.xlu0 %v107_v6, %s137_s28  ;;  %49 = vrot.lane.b32.xlu1 %v108_v7, %s138_s29 }
  0x13   :  { %55 = vrot.lane.b32.xlu2 %v109_v8, %s139_s3 }
  0x1a   :  { %61 = vrot.lane.b32.xlu0 %v110_v9, %s140_s8  ;;  %67 = vrot.lane.b32.xlu1 %v111_v10, %s141_s9 }
  0x1b   :  { %73 = vrot.lane.b32.xlu2 %v112_v11, %s142_s12 }
  0x22   :  { %79 = vrot.lane.b32.xlu0 %v113_v12, %s143_s17  ;;  %85 = vrot.lane.b32.xlu1 %v114_v13, %s144_s18 }
  0x23   :  { %91 = vrot.lane.b32.xlu2 %v115_v14, %s145_s21 }
  0x5d   :  { %v32_v16 = vpop.permute.xlu2 %31  }
  0x65   :  { %v38_v17 = vpop.permute.xlu2 %37  }
  0x6d   :  { %v56_v18 = vpop.permute.xlu2 %55  }
  0x74   :  { %v8_v19 = vpop.permute.xlu0 %7   ;;  %v20_v20 = vpop.permute.xlu1 %19  }
  0x75   :  { %10 = vst.msk [vmem:[#allocation0] sm:$0x1] %vm9_vm1, %v8_v19   ;;  %v74_v21 = vpop.permute.xlu2 %73  }
  0x7c   :  { %v14_v22 = vpop.permute.xlu0 %13   ;;  %v26_v23 = vpop.permute.xlu1 %25  }
  0x7d   :  { %16 = vst.msk [vmem:[#allocation0] sm:$0x1] %vm15_vm2, %v14_v22   ;;  %v92_v24 = vpop.permute.xlu2 %91  }
  0x7e   :  { %22 = vst.msk [vmem:[#allocation0] sm:$0x1] %vm21_vm3, %v20_v20  }
  0x7f   :  { %28 = vst.msk [vmem:[#allocation0] sm:$0x1] %vm27_vm4, %v26_v23  }
  0x80   :  { %34 = vst.msk [vmem:[#allocation0] sm:$0x1] %vm33_vm5, %v32_v16  }
  0x81   :  { %40 = vst.msk [vmem:[#allocation0] sm:$0x1] %vm39_vm6, %v38_v17  }
  0x84   :  { %v44_v25 = vpop.permute.xlu0 %43   ;;  %v50_v26 = vpop.permute.xlu1 %49  }
  0x85   :  { %46 = vst.msk [vmem:[#allocation0] sm:$0x1] %vm45_vm7, %v44_v25  }
  0x86   :  { %52 = vst.msk [vmem:[#allocation0] sm:$0x1] %vm51_vm8, %v50_v26  }
  0x87   :  { %58 = vst.msk [vmem:[#allocation0] sm:$0x1] %vm57_vm9, %v56_v18  }
  0x8c   :  { %v62_v27 = vpop.permute.xlu0 %61   ;;  %v68_v28 = vpop.permute.xlu1 %67  }
  0x8d   :  { %64 = vst.msk [vmem:[#allocation0] sm:$0x1] %vm63_vm10, %v62_v27  }
  0x8e   :  { %70 = vst.msk [vmem:[#allocation0] sm:$0x1] %vm69_vm11, %v68_v28  }
  0x8f   :  { %76 = vst.msk [vmem:[#allocation0] sm:$0x1] %vm75_vm12, %v74_v21  }
  0x94   :  { %v80_v29 = vpop.permute.xlu0 %79   ;;  %v86_v30 = vpop.permute.xlu1 %85  }
  0x95   :  { %82 = vst.msk [vmem:[#allocation0] sm:$0x1] %vm81_vm13, %v80_v29  }
  0x96   :  { %88 = vst.msk [vmem:[#allocation0] sm:$0x1] %vm87_vm14, %v86_v30  }
  0x97   :  { %94 = vst.msk [vmem:[#allocation0] sm:$0x1] %vm93_vm15, %v92_v24  }
  0x9e   :  { %v97_v31 = vld [vmem:[#allocation0] sm:$0x1] }
  0x9f   :  { %100 = vst [vmem:[%s208_s1] sm:$0x1] %v97_v31 }

// kernel: double_conv.2
= control target key start
LH: loop header
LB: loop body
LE: loop exit
PB: predicated region body
PF: predicated region fallthrough
CT: control target
= control target key end

     0   :  { %vm24_vm0 = vcmask 519168   ;;  %v621_v2 = vmov 0   ;;  %vm39_vm1 = vsmask.f32 256  ;;  %vm40_vm2 = vsmask.f32 4368  ;;  %s765_s1 = inlined_call_operand.vmem [shape: f32[1,64], index: 1, kind: input, shape index: {}, may-alias: {1,2}]   ;;  %s766_s2 = inlined_call_operand.vmem [shape: f32[1,64], index: 2, kind: input, shape index: {}, may-alias: {1,2}]   ;;  %s767_s3 = inlined_call_operand.vmem [shape: bf16[3,64,128], index: 3, kind: input, shape index: {}]   ;;  %s768_s0 = inlined_call_operand.vmem [shape: f32[2,16,64], index: 0, kind: input, shape index: {}]   ;;  %s769_s4 = inlined_call_operand.vmem [shape: bf16[2,16,128], index: 4, kind: output, shape index: {0}]   ;;  %s770_s5 = inlined_call_operand.vmem [shape: f32[1,8,128], index: 5, kind: output, shape index: {1}]  }
   0x1   :  { %v592_v0 = vld [vmem:[%s767_s3 + $0x18] sm:$0xff]  ;;  %25 = vst.msk [vmem:[#allocation2] sm:$0xf] %vm24_vm0, %v621_v2  ;;  %v591_v4 = vld [vmem:[%s767_s3 + $0x10] sm:$0xff]  ;;  %v31_v7 = vld [vmem:[%s768_s0] sm:$0xff]  ;;  %vm70_vm4 = vcmask 516096  }
   0x2   :  { %v604_v1 = vld [vmem:[%s767_s3 + $0x58] sm:$0xff]  ;;  %26 = vst.msk [vmem:[#allocation2 + $0x4] sm:$0xf] %vm24_vm0, %v621_v2  ;;  %176 = vmatpush.bf16.msra.mxu0 %v592_v0  ;;  %616 = vmatpush.bf16.msra.mxu3 %v592_v0  ;;  %v603_v5 = vld [vmem:[%s767_s3 + $0x50] sm:$0xff]  ;;  %v32_v8 = vld [vmem:[%s768_s0 + $0x8] sm:$0xff]  ;;  %v35_v9 = vpack.c.bf16 %v31_v7, %v31_v7  ;;  %vm100_vm6 = vcmask 519169  }
   0x3   :  { %v598_v3 = vld [vmem:[%s767_s3 + $0x38] sm:$0xff]  ;;  %397 = vmatpush.bf16.msra.mxu2 %v604_v1  ;;  %v597_v6 = vld [vmem:[%s767_s3 + $0x30] sm:$0xff]  ;;  %27 = vst.msk [vmem:[#allocation2 + $0x8] sm:$0xf] %vm24_vm0, %v621_v2  ;;  %v36_v10 = vpack.c.bf16 %v32_v8, %v32_v8  ;;  %vm63_vm3 = vsmask.f32 7938  ;;  %vm694_vm8 = vmor %vm39_vm1, %vm40_vm2 }
   0x4   :  { %293 = vmatpush.bf16.msra.mxu1 %v598_v3  ;;  %28 = vst.msk [vmem:[#allocation2 + $0xc] sm:$0xf] %vm24_vm0, %v621_v2  ;;  %v33_v11 = vld [vmem:[%s768_s0 + $0x10] sm:$0xff]  ;;  %v34_v12 = vld [vmem:[%s768_s0 + $0x18] sm:$0xff]  ;;  %vm75_vm5 = vsmask.f32 1280  ;;  %vm706_vm10 = vmand %vm24_vm0, %vm63_vm3 }
   0x5   :  { %v37_v13 = vpack.c.bf16 %v33_v11, %v33_v11  ;;  %vm29_vm7 = vcmask 517120   ;;  %v590_v14 = vld [vmem:[%s767_s3 + $0x8] sm:$0xff]  ;;  %v43_v15 = vshrl.u32 %v35_v9, 16  ;;  %v46_v16 = vshll.u32 %v35_v9, 16  ;;  %v589_v25 = vld [vmem:[%s767_s3] sm:$0xff]  ;;  %vm713_vm12 = vmand %vm70_vm4, %vm39_vm1 }
   0x6   :  { %177 = vmatpush.bf16.msra.mxu0 %v591_v4  ;;  %617 = vmatpush.bf16.msra.mxu3 %v591_v4  ;;  %v51_v17 = vshrl.u32 %v36_v10, 16  ;;  %v54_v18 = vshll.u32 %v36_v10, 16  ;;  %v602_v19 = vld [vmem:[%s767_s3 + $0x48] sm:$0xff]  ;;  %v38_v22 = vpack.c.bf16 %v34_v12, %v34_v12  ;;  %vm101_vm9 = vsmask.f32 7942  ;;  %v601_v45 = vld [vmem:[%s767_s3 + $0x40] sm:$0xff]  ;;  %vm108_vm15 = vmand %vm29_vm7, %vm75_vm5 }
   0x7   :  { %398 = vmatpush.bf16.msra.mxu2 %v603_v5  ;;  %v596_v21 = vld [vmem:[%s767_s3 + $0x28] sm:$0xff]  ;;  %v79_v23 = vshrl.u32 %v37_v13, 16  ;;  %v82_v24 = vshll.u32 %v37_v13, 16  ;;  %v45_v26 = vrot.slane %v43_v15, 7  ;;  %vm76_vm11 = vsmask.f32 5392  ;;  %vm719_vm13 = vmand %vm100_vm6, %vm101_vm9 }
   0x8   :  { %294 = vmatpush.bf16.msra.mxu1 %v597_v6  ;;  %v53_v27 = vrot.slane %v51_v17, 7  ;;  %30 = vst.msk [vmem:[#allocation2 + $0x10] sm:$0x3] %vm29_vm7, %v621_v2  ;;  %v65_v29 = vld [vmem:[#allocation2] sm:$0xf]  ;;  %v88_v33 = vshrl.u32 %v38_v22, 16  ;;  %vm77_vm14 = vmor %vm75_vm5, %vm76_vm11 }
   0x9   :  { %v81_v31 = vrot.slane %v79_v23, 6  ;;  %v84_v32 = vrot.slane %v82_v24, 7  ;;  %v91_v34 = vshll.u32 %v38_v22, 16  ;;  %v48_v35 = vor.u32 %v46_v16, %v45_v26  ;;  %v595_v46 = vld [vmem:[%s767_s3 + $0x20] sm:$0xff] }
   0xa   :  { %178 = vmatpush.bf16.msra.mxu0 %v590_v14  ;;  %618 = vmatpush.bf16.msra.mxu3 %v590_v14  ;;  %v49_v36 = vrot.slane %v45_v26, 4  ;;  %v56_v37 = vor.u32 %v54_v18, %v53_v27  ;;  %v58_v38 = vrot.slane %v53_v27, 4  ;;  %v72_v39 = vld [vmem:[#allocation2 + $0x8] sm:$0x1]  ;;  %v103_v41 = vld [vmem:[#allocation2 + $0x8] sm:$0xe] }
   0xb   :  { %399 = vmatpush.bf16.msra.mxu2 %v602_v19  ;;  %v85_v42 = vor.u32 %v84_v32, %v81_v31  ;;  %v90_v43 = vrot.slane %v88_v33, 6  ;;  %v93_v44 = vrot.slane %v91_v34, 7  ;;  %v66_v48 = vsel %vm706_vm10, %v48_v35, %v65_v29 }
   0xc   :  { %295 = vmatpush.bf16.msra.mxu1 %v596_v21  ;;  %v57_v47 = vsel %vm694_vm8, %v49_v36, %v56_v37  ;;  %v73_v49 = vsel %vm713_vm12, %v58_v38, %v72_v39  ;;  %67 = vst [vmem:[#allocation2] sm:$0xf] %v66_v48  ;;  %vm162_vm1 = vcmask 523264   ;;  %vm354_vm2 = vcmask 1046528  }
   0xd   :  { %v86_v50 = vrot.slane %v85_v42, 4  ;;  %v94_v51 = vor.u32 %v93_v44, %v90_v43  ;;  %v104_v52 = vsel %vm719_vm13, %v85_v42, %v103_v41  ;;  %69 = vst.msk [vmem:[#allocation2 + $0x4] sm:$0xf] %vm24_vm0, %v57_v47  ;;  %vm475_vm3 = vcmask 1040384  }
   0xe   :  { %179 = vmatpush.bf16.msra.mxu0 %v589_v25  ;;  %619 = vmatpush.bf16.msra.mxu3 %v589_v25  ;;  %74 = vst [vmem:[#allocation2 + $0x8] sm:$0x1] %v73_v49  ;;  %vm477_vm4 = vcmask 1041408  }
   0xf   :  { %v95_v53 = vsel %vm77_vm14, %v86_v50, %v94_v51  ;;  %400 = vmatpush.bf16.msra.mxu2 %v601_v45  ;;  %v96_v54 = vrot.slane %v94_v51, 4  ;;  %v109_v55 = vld [vmem:[#allocation2 + $0x10] sm:$0x3]  ;;  %105 = vst [vmem:[#allocation2 + $0x8] sm:$0xe] %v104_v52 }
  0x10   :  { %296 = vmatpush.bf16.msra.mxu1 %v595_v46  ;;  %106 = vst.msk [vmem:[#allocation2 + $0xc] sm:$0xf] %vm24_vm0, %v95_v53  ;;  %vm232_vm0 = vsmask.f32 7424 }
  0x11   :  { %v110_v56 = vsel %vm108_vm15, %v96_v54, %v109_v55 }
  0x12   :  { %111 = vst [vmem:[#allocation2 + $0x10] sm:$0x3] %v110_v56 }
  0x13   :  { %v560_v57 = vld [vmem:[#allocation2] sm:$0xe] }
  0x14   :  { %v587_v58 = vld [vmem:[#allocation2] sm:$0xff] }
  0x15   :  { %v599_v59 = vld [vmem:[#allocation2] sm:$0xf0]  ;;  %512 = vmatmul.msk.bf16.vlgmr.msra.gmra.mxu0 %vm162_vm1, %v587_v58 }
  0x16   :  { %v593_v60 = vld [vmem:[#allocation2] sm:$0xff]  ;;  %v561_v61 = vor.u32 %v599_v59, %v560_v57 }
  0x17   :  { %v234_v62 = vshrl.u32 %v593_v60, 16  ;;  %v236_v63 = vshll.u32 %v593_v60, 16  ;;  %v588_v0 = vld [vmem:[#allocation2 + $0x8] sm:$0xff] }
  0x18   :  { %v600_v1 = vld [vmem:[#allocation2 + $0x8] sm:$0xff]  ;;  %v355_v2 = vrot.slane %v561_v61, 1  ;;  %513 = vmatmul.msk.bf16.vlgmr.msra.gmra.mxu3 %vm162_vm1, %v588_v0 }
  0x19   :  { %v594_v3 = vld [vmem:[#allocation2 + $0x8] sm:$0xff]  ;;  %v238_v4 = vrot.slane %v236_v63, 1  ;;  %v356_v5 = vrot.slane %v600_v1, 1  ;;  %v209_v7 = vld [vmem:[#allocation2 + $0x10] sm:$0x3] }
  0x1a   :  { %v241_v6 = vshll.u32 %v594_v3, 16  ;;  %v331_v9 = vld [vmem:[#allocation2 + $0x10] sm:$0x3]  ;;  %v228_v12 = vunpack.c.l.b16 %v209_v7  ;;  %v245_v19 = vshrl.u32 %v594_v3, 16 }
  0x1b   :  { %v239_v8 = vor.u32 %v238_v4, %v234_v62  ;;  %v357_v10 = vsel %vm354_vm2, %v355_v2, %v356_v5  ;;  %v350_v14 = vunpack.c.l.b16 %v331_v9  ;;  %v116_v15 = vld [vmem:[#allocation2 + $0x10] sm:$0x1] }
  0x1c   :  { %v243_v11 = vrot.slane %v241_v6, 1  ;;  %582 = vmatmul.msk.bf16.vlgmr.msra.gmra.mxu2 %vm162_vm1, %v357_v10  ;;  %v231_v16 = vpack.c.b16 %v228_v12, %v228_v12  ;;  %v134_v17 = vunpack.c.l.b16 %v116_v15 }
  0x1d   :  { %v353_v18 = vpack.c.b16 %v350_v14, %v350_v14 }
  0x1e   :  { %v244_v13 = vsel %vm232_vm0, %v239_v8, %v243_v11  ;;  %v249_v20 = vshll.u32 %v231_v16, 16  ;;  %v137_v21 = vpack.c.b16 %v134_v17, %v134_v17  ;;  %v247_v23 = vor.u32 %v245_v19, %v243_v11 }
  0x1f   :  { %547 = vmatmul.msk.bf16.vlgmr.msra.gmra.mxu1 %vm162_vm1, %v244_v13  ;;  %v358_v22 = vrot.slane %v353_v18, 1  ;;  %v253_v27 = vshrl.u32 %v231_v16, 16 }
  0x20   :  { %v251_v24 = vrot.slane %v249_v20, 1 }
  0x21   :  { %v359_v25 = vsel %vm354_vm2, %v356_v5, %v358_v22 }
  0x22   :  { %v252_v26 = vsel %vm232_vm0, %v247_v23, %v251_v24  ;;  %v255_v28 = vor.u32 %v253_v27, %v251_v24 }
  0x28   :  { %514 = vmatmul.msk.bf16.gmra.mxu3 %vm162_vm1, %v137_v21 }
  0x2c   :  { %583 = vmatmul.msk.bf16.gmra.mxu2 %vm162_vm1, %v359_v25 }
  0x2f   :  { %548 = vmatmul.msk.bf16.gmra.mxu1 %vm162_vm1, %v252_v26 }
  0x3c   :  { %584 = vmatmul.msk.bf16.gmra.mxu2 %vm162_vm1, %v358_v22 }
  0x3f   :  { %549 = vmatmul.msk.bf16.gmra.mxu1 %vm162_vm1, %v255_v28 }
  0x92   :  { %v181_v29 = vpop.f32.mrf.mxu0 }
  0x9a   :  { %v183_v35 = vpop.f32.mrf.mxu0 }
  0x9b   :  { %v186_v31 = vpop.f32.mrf.mxu3 }
  0x9c   :  { %v298_v30 = vpop.f32.mrf.mxu1 }
  0x9d   :  { %v312_v32 = vadd.f32 %v298_v30, %v181_v29 }
  0x9f   :  { %v402_v33 = vpop.f32.mrf.mxu2 }
  0xa0   :  { %v416_v34 = vadd.f32 %v402_v33, %v312_v32 }
  0xa2   :  { %v440_v58 = vmul.f32 %v416_v34, %v416_v34 }
  0xa3   :  { %v188_v37 = vpop.f32.mrf.mxu3 }
  0xa4   :  { %v300_v36 = vpop.f32.mrf.mxu1 }
  0xa5   :  { %v313_v38 = vadd.f32 %v300_v36, %v183_v35 }
  0xa7   :  { %v404_v39 = vpop.f32.mrf.mxu2 }
  0xa8   :  { %v417_v40 = vadd.f32 %v404_v39, %v313_v38 }
  0xaa   :  { %v608_v41 = vpack.c.bf16 %v417_v40, %v416_v34  ;;  %v441_v56 = vmul.f32 %v417_v40, %v417_v40  ;;  %v432_v60 = vadd.f32 %v417_v40, %v416_v34 }
  0xab   :  { %v191_v43 = vpop.f32.mrf.mxu3 }
  0xac   :  { %v303_v42 = vpop.f32.mrf.mxu1  ;;  %609 = vst [vmem:[%s769_s4] sm:$0xff] %v608_v41   ;;  %v442_v61 = vadd.f32 %v441_v56, %v440_v58  ;;  %v433_v0 = vrot.slane %v432_v60, 4 }
  0xad   :  { %199 = vst [vmem:[#allocation3 + $0x20] sm:$0x3] %v191_v43  ;;  %v314_v44 = vadd.f32 %v303_v42, %v186_v31 }
  0xae   :  { %v443_v1 = vrot.slane %v442_v61, 4  ;;  %v434_v3 = vadd.f32 %v433_v0, %v432_v60 }
  0xaf   :  { %v407_v45 = vpop.f32.mrf.mxu2 }
  0xb0   :  { %v418_v46 = vadd.f32 %v407_v45, %v314_v44  ;;  %v444_v4 = vadd.f32 %v443_v1, %v442_v61  ;;  %v435_v10 = vrot.slane %v434_v3, 2 }
  0xb2   :  { %423 = vst [vmem:[#allocation3 + $0x10] sm:$0xff] %v418_v46  ;;  %v445_v11 = vrot.slane %v444_v4, 2  ;;  %v436_v16 = vadd.f32 %v435_v10, %v434_v3 }
  0xb3   :  { %v193_v48 = vpop.f32.mrf.mxu3 }
  0xb4   :  { %v305_v47 = vpop.f32.mrf.mxu1  ;;  %v204_v52 = vld [vmem:[#allocation3 + $0x20] sm:$0x3]  ;;  %v446_v17 = vadd.f32 %v445_v11, %v444_v4  ;;  %v437_v22 = vrot.slane %v436_v16, 1 }
  0xb5   :  { %v315_v49 = vadd.f32 %v305_v47, %v188_v37 }
  0xb6   :  { %v447_v23 = vrot.slane %v446_v17, 1  ;;  %v438_v28 = vadd.f32 %v437_v22, %v436_v16 }
  0xb7   :  { %v409_v50 = vpop.f32.mrf.mxu2 }
  0xb8   :  { %v419_v51 = vadd.f32 %v409_v50, %v315_v49  ;;  %v448_v29 = vadd.f32 %v447_v23, %v446_v17 }
  0xba   :  { %424 = vst [vmem:[#allocation3 + $0x18] sm:$0xff] %v419_v51 }
  0xbc   :  { %v308_v53 = vpop.f32.mrf.mxu1 }
  0xbd   :  { %v316_v54 = vadd.f32 %v308_v53, %v204_v52 }
  0xbf   :  { %321 = vst [vmem:[#allocation3 + $0x20] sm:$0x3] %v316_v54  ;;  %v412_v55 = vpop.f32.mrf.mxu2 }
  0xc1   :  { %v450_v2 = vld [vmem:[#allocation3 + $0x12] sm:$0xff] }
  0xc2   :  { %v465_v6 = vmul.f32 %v450_v2, %v450_v2 }
  0xc4   :  { %v310_v57 = vpop.f32.mrf.mxu1 }
  0xc6   :  { %v326_v59 = vld [vmem:[#allocation3 + $0x20] sm:$0x3] }
  0xc7   :  { %v420_v62 = vadd.f32 %v412_v55, %v326_v59  ;;  %v414_v63 = vpop.f32.mrf.mxu2 }
  0xc9   :  { %425 = vst [vmem:[#allocation3 + $0x20] sm:$0x3] %v420_v62 }
  0xd0   :  { %v451_v5 = vld [vmem:[#allocation3 + $0x1a] sm:$0xff] }
  0xd1   :  { %v613_v7 = vpack.c.bf16 %v451_v5, %v450_v2  ;;  %v457_v8 = vadd.f32 %v451_v5, %v450_v2  ;;  %v466_v9 = vmul.f32 %v451_v5, %v451_v5 }
  0xd3   :  { %615 = vst [vmem:[%s769_s4 + $0x8] sm:$0xff] %v613_v7   ;;  %v458_v12 = vrot.slane %v457_v8, 4  ;;  %v467_v13 = vadd.f32 %v466_v9, %v465_v6 }
  0xd5   :  { %v459_v14 = vadd.f32 %v458_v12, %v457_v8  ;;  %v468_v15 = vrot.slane %v467_v13, 4 }
  0xd7   :  { %v460_v18 = vrot.slane %v459_v14, 2  ;;  %v469_v19 = vadd.f32 %v468_v15, %v467_v13 }
  0xd9   :  { %v461_v20 = vadd.f32 %v460_v18, %v459_v14  ;;  %v470_v21 = vrot.slane %v469_v19, 2 }
  0xdb   :  { %v462_v24 = vrot.slane %v461_v20, 1  ;;  %v471_v25 = vadd.f32 %v470_v21, %v469_v19 }
  0xdd   :  { %v463_v26 = vadd.f32 %v462_v24, %v461_v20  ;;  %v472_v27 = vrot.slane %v471_v25, 1 }
  0xdf   :  { %v473_v30 = vadd.f32 %v472_v27, %v471_v25  ;;  %v464_v31 = vadd.f32 %v463_v26, %v438_v28 }
  0xe1   :  { %v474_v32 = vadd.f32 %v473_v30, %v448_v29 }
  0xe3   :  { %v476_v33 = vsel %vm475_vm3, %v464_v31, %v474_v32 }
  0xe4   :  { %v478_v34 = vsel %vm477_vm4, %v476_v33, 0.0 }
  0xe5   :  { %479 = vst [vmem:[%s770_s5] sm:$0xff] %v478_v34 }

// kernel: double_conv.3
= control target key start
LH: loop header
LB: loop body
LE: loop exit
PB: predicated region body
PF: predicated region fallthrough
CT: control target
= control target key end

     0   :  { %v786_v3 = vmov 0   ;;  %vm61_vm0 = vsmask.f32 256  ;;  %vm62_vm1 = vsmask.f32 4368  ;;  %vm84_vm2 = vcmask 1043456   ;;  %s964_s3 = inlined_call_operand.vmem [shape: bf16[3,128,128], index: 3, kind: input, shape index: {}]   ;;  %s965_s0 = inlined_call_operand.vmem [shape: bf16[2,16,128], index: 0, kind: input, shape index: {}]   ;;  %s966_s1 = inlined_call_operand.vmem [shape: f32[1,128], index: 1, kind: input, shape index: {}]   ;;  %s967_s2 = inlined_call_operand.vmem [shape: f32[1,128], index: 2, kind: input, shape index: {}]   ;;  %s968_s4 = inlined_call_operand.vmem [shape: f32[2,16,128], index: 4, kind: output, shape index: {0}]   ;;  %s969_s5 = inlined_call_operand.vmem [shape: f32[1,8,128], index: 5, kind: output, shape index: {1}]  }
   0x1   :  { %v745_v0 = vld [vmem:[%s964_s3 + $0x38] sm:$0xff]  ;;  %24 = vst [vmem:[#allocation2] sm:$0xf] %v786_v3  ;;  %v744_v4 = vld [vmem:[%s964_s3 + $0x30] sm:$0xff]  ;;  %v743_v7 = vld [vmem:[%s964_s3 + $0x28] sm:$0xff]  ;;  %vm91_vm3 = vcmask 1040384  }
   0x2   :  { %v765_v1 = vld [vmem:[%s964_s3 + $0xb8] sm:$0xff]  ;;  %25 = vst [vmem:[#allocation2 + $0x4] sm:$0xf] %v786_v3  ;;  %218 = vmatpush.bf16.msra.mxu0 %v745_v0  ;;  %775 = vmatpush.bf16.msra.mxu3 %v745_v0  ;;  %v764_v5 = vld [vmem:[%s964_s3 + $0xb0] sm:$0xff]  ;;  %v763_v8 = vld [vmem:[%s964_s3 + $0xa8] sm:$0xff]  ;;  %vm121_vm6 = vcmask 1043457  }
   0x3   :  { %v755_v2 = vld [vmem:[%s964_s3 + $0x78] sm:$0xff]  ;;  %491 = vmatpush.bf16.msra.mxu2 %v765_v1  ;;  %v754_v6 = vld [vmem:[%s964_s3 + $0x70] sm:$0xff]  ;;  %26 = vst [vmem:[#allocation2 + $0x8] sm:$0xf] %v786_v3  ;;  %v753_v9 = vld [vmem:[%s964_s3 + $0x68] sm:$0xff]  ;;  %vm128_vm11 = vcmask 1041408  }
   0x4   :  { %361 = vmatpush.bf16.msra.mxu1 %v755_v2  ;;  %27 = vst [vmem:[#allocation2 + $0xc] sm:$0xf] %v786_v3  ;;  %v767_v10 = vld [vmem:[%s965_s0] sm:$0xff]   ;;  %v774_v16 = vld [vmem:[%s965_s0 + $0x8] sm:$0xff]   ;;  %v741_v27 = vld [vmem:[%s964_s3 + $0x18] sm:$0xff] }
   0x5   :  { %28 = vst [vmem:[#allocation2 + $0x10] sm:$0x3] %v786_v3  ;;  %v784_v11 = vld [vmem:[%s966_s1] ss:$0 sm:$0xff]  ;;  %v768_v12 = vunpack.c.l.bf16 %v767_v10  ;;  %v769_v13 = vunpack.c.h.bf16 %v767_v10  ;;  %v772_v21 = vunpack.c.l.bf16 %v774_v16  ;;  %v773_v22 = vunpack.c.h.bf16 %v774_v16  ;;  %v761_v28 = vld [vmem:[%s964_s3 + $0x98] sm:$0xff]  ;;  %v740_v38 = vld [vmem:[%s964_s3 + $0x10] sm:$0xff] }
   0x6   :  { %219 = vmatpush.bf16.msra.mxu0 %v744_v4  ;;  %776 = vmatpush.bf16.msra.mxu3 %v744_v4  ;;  %v785_v14 = vld [vmem:[%s967_s2] ss:$0 sm:$0xff]  ;;  %v751_v29 = vld [vmem:[%s964_s3 + $0x58] sm:$0xff]  ;;  %vm85_vm4 = vsmask.f32 7938  ;;  %v760_v39 = vld [vmem:[%s964_s3 + $0x90] sm:$0xff] }
   0x7   :  { %492 = vmatpush.bf16.msra.mxu2 %v764_v5  ;;  %v742_v15 = vld [vmem:[%s964_s3 + $0x20] sm:$0xff]  ;;  %v41_v19 = vmul.f32 %v784_v11, %v768_v12  ;;  %v42_v20 = vmul.f32 %v784_v11, %v769_v13  ;;  %v43_v25 = vmul.f32 %v784_v11, %v772_v21  ;;  %v44_v26 = vmul.f32 %v784_v11, %v773_v22  ;;  %v750_v40 = vld [vmem:[%s964_s3 + $0x50] sm:$0xff]  ;;  %vm885_vm7 = vmor %vm61_vm0, %vm62_vm1 }
   0x8   :  { %362 = vmatpush.bf16.msra.mxu1 %v754_v6  ;;  %v762_v17 = vld [vmem:[%s964_s3 + $0xa0] sm:$0xff]  ;;  %vm96_vm5 = vsmask.f32 1280  ;;  %vm97_vm8 = vsmask.f32 5392  ;;  %v739_v48 = vld [vmem:[%s964_s3 + $0x8] sm:$0xff]  ;;  %vm894_vm10 = vmand %vm84_vm2, %vm85_vm4 }
   0x9   :  { %v752_v18 = vld [vmem:[%s964_s3 + $0x60] sm:$0xff]  ;;  %v49_v23 = vadd.f32 %v785_v14, %v41_v19  ;;  %v50_v24 = vadd.f32 %v785_v14, %v42_v20  ;;  %v51_v32 = vadd.f32 %v785_v14, %v43_v25  ;;  %v52_v33 = vadd.f32 %v785_v14, %v44_v26  ;;  %vm900_vm12 = vmand %vm91_vm3, %vm61_vm0  ;;  %v759_v59 = vld [vmem:[%s964_s3 + $0x88] sm:$0xff] }
   0xa   :  { %220 = vmatpush.bf16.msra.mxu0 %v743_v7  ;;  %777 = vmatpush.bf16.msra.mxu3 %v743_v7  ;;  %vm122_vm9 = vsmask.f32 7942  ;;  %v87_v52 = vld [vmem:[#allocation2] sm:$0xf]  ;;  %v93_v54 = vld [vmem:[#allocation2 + $0x8] sm:$0x1]  ;;  %vm930_vm14 = vmor %vm96_vm5, %vm97_vm8 }
   0xb   :  { %493 = vmatpush.bf16.msra.mxu2 %v763_v8  ;;  %v53_v30 = vmax.f32 %v49_v23, 0.0  ;;  %v54_v31 = vmax.f32 %v50_v24, 0.0  ;;  %v55_v36 = vmax.f32 %v51_v32, 0.0  ;;  %v56_v37 = vmax.f32 %v52_v33, 0.0  ;;  %v749_v60 = vld [vmem:[%s964_s3 + $0x48] sm:$0xff]  ;;  %vm918_vm13 = vmand %vm121_vm6, %vm122_vm9  ;;  %v738_v10 = vld [vmem:[%s964_s3] sm:$0xff] }
   0xc   :  { %363 = vmatpush.bf16.msra.mxu1 %v753_v9  ;;  %v124_v9 = vld [vmem:[#allocation2 + $0x8] sm:$0xe]  ;;  %v758_v11 = vld [vmem:[%s964_s3 + $0x80] sm:$0xff]  ;;  %vm129_vm15 = vmand %vm128_vm11, %vm96_vm5  ;;  %vm434_vm0 = vcmask 1046528   ;;  %vm286_vm1 = vsmask.f32 7424 }
   0xd   :  { %v57_v34 = vpack.c.bf16 %v53_v30, %v53_v30  ;;  %v58_v35 = vpack.c.bf16 %v54_v31, %v54_v31  ;;  %v59_v46 = vpack.c.bf16 %v55_v36, %v55_v36  ;;  %v60_v47 = vpack.c.bf16 %v56_v37, %v56_v37  ;;  %v130_v16 = vld [vmem:[#allocation2 + $0x10] sm:$0x3] }
   0xe   :  { %221 = vmatpush.bf16.msra.mxu0 %v742_v15  ;;  %778 = vmatpush.bf16.msra.mxu3 %v742_v15  ;;  %v748_v15 = vld [vmem:[%s964_s3 + $0x40] sm:$0xff] }
   0xf   :  { %494 = vmatpush.bf16.msra.mxu2 %v762_v17  ;;  %v65_v41 = vshrl.u32 %v57_v34, 16  ;;  %v68_v42 = vshll.u32 %v57_v34, 16  ;;  %v73_v43 = vshrl.u32 %v58_v35, 16  ;;  %v76_v44 = vshll.u32 %v58_v35, 16 }
  0x10   :  { %364 = vmatpush.bf16.msra.mxu1 %v752_v18  ;;  %v100_v55 = vshrl.u32 %v59_v46, 16  ;;  %v103_v56 = vshll.u32 %v59_v46, 16  ;;  %v109_v57 = vshrl.u32 %v60_v47, 16  ;;  %v112_v58 = vshll.u32 %v60_v47, 16 }
  0x11   :  { %v67_v49 = vrot.slane %v65_v41, 7  ;;  %v75_v50 = vrot.slane %v73_v43, 7 }
  0x12   :  { %222 = vmatpush.bf16.msra.mxu0 %v741_v27  ;;  %779 = vmatpush.bf16.msra.mxu3 %v741_v27  ;;  %v102_v1 = vrot.slane %v100_v55, 6  ;;  %v105_v2 = vrot.slane %v103_v56, 7  ;;  %v111_v3 = vrot.slane %v109_v57, 6  ;;  %v114_v4 = vrot.slane %v112_v58, 7 }
  0x13   :  { %495 = vmatpush.bf16.msra.mxu2 %v761_v28  ;;  %v70_v61 = vor.u32 %v68_v42, %v67_v49  ;;  %v71_v62 = vrot.slane %v67_v49, 4  ;;  %v78_v63 = vor.u32 %v76_v44, %v75_v50  ;;  %v80_v0 = vrot.slane %v75_v50, 4 }
  0x14   :  { %365 = vmatpush.bf16.msra.mxu1 %v751_v29  ;;  %v106_v13 = vor.u32 %v105_v2, %v102_v1  ;;  %v115_v14 = vor.u32 %v114_v4, %v111_v3 }
  0x15   :  { %v79_v5 = vsel %vm885_vm7, %v71_v62, %v78_v63  ;;  %v88_v6 = vsel %vm894_vm10, %v70_v61, %v87_v52  ;;  %v94_v7 = vsel %vm900_vm12, %v80_v0, %v93_v54 }
  0x16   :  { %223 = vmatpush.bf16.msra.mxu0 %v740_v38  ;;  %780 = vmatpush.bf16.msra.mxu3 %v740_v38  ;;  %89 = vst [vmem:[#allocation2] sm:$0xf] %v88_v6  ;;  %v107_v17 = vrot.slane %v106_v13, 4  ;;  %v125_v18 = vsel %vm918_vm13, %v106_v13, %v124_v9  ;;  %v117_v19 = vrot.slane %v115_v14, 4 }
  0x17   :  { %496 = vmatpush.bf16.msra.mxu2 %v760_v39  ;;  %90 = vst [vmem:[#allocation2 + $0x4] sm:$0xf] %v79_v5 }
  0x18   :  { %366 = vmatpush.bf16.msra.mxu1 %v750_v40  ;;  %95 = vst [vmem:[#allocation2 + $0x8] sm:$0x1] %v94_v7  ;;  %v116_v20 = vsel %vm930_vm14, %v107_v17, %v115_v14  ;;  %v131_v21 = vsel %vm129_vm15, %v117_v19, %v130_v16 }
  0x19   :  { %126 = vst [vmem:[#allocation2 + $0x8] sm:$0xe] %v125_v18 }
  0x1a   :  { %224 = vmatpush.bf16.msra.mxu0 %v739_v48  ;;  %781 = vmatpush.bf16.msra.mxu3 %v739_v48  ;;  %127 = vst [vmem:[#allocation2 + $0xc] sm:$0xf] %v116_v20 }
  0x1b   :  { %497 = vmatpush.bf16.msra.mxu2 %v759_v59  ;;  %132 = vst [vmem:[#allocation2 + $0x10] sm:$0x3] %v131_v21 }
  0x1c   :  { %367 = vmatpush.bf16.msra.mxu1 %v749_v60 }
  0x1d   :  { %v696_v22 = vld [vmem:[#allocation2] sm:$0xe] }
  0x1e   :  { %225 = vmatpush.bf16.msra.mxu0 %v738_v10  ;;  %782 = vmatpush.bf16.msra.mxu3 %v738_v10  ;;  %v736_v23 = vld [vmem:[#allocation2] sm:$0xff] }
  0x1f   :  { %498 = vmatpush.bf16.msra.mxu2 %v758_v11  ;;  %v756_v24 = vld [vmem:[#allocation2] sm:$0xf0] }
  0x20   :  { %368 = vmatpush.bf16.msra.mxu1 %v748_v15  ;;  %v746_v25 = vld [vmem:[#allocation2] sm:$0xff]  ;;  %v697_v26 = vor.u32 %v756_v24, %v696_v22 }
  0x21   :  { %226 = vmatmul.bf16.vlgmr.msra.gmra.mxu0 %v736_v23  ;;  %v288_v27 = vshrl.u32 %v746_v25, 16  ;;  %v290_v28 = vshll.u32 %v746_v25, 16  ;;  %v737_v29 = vld [vmem:[#allocation2 + $0x8] sm:$0xff] }
  0x22   :  { %v757_v30 = vld [vmem:[#allocation2 + $0x8] sm:$0xff]  ;;  %v435_v31 = vrot.slane %v697_v26, 1  ;;  %v255_v34 = vld [vmem:[#allocation2 + $0x10] sm:$0x3]  ;;  %231 = vmatmul.bf16.vlgmr.msra.gmra.mxu3 %v737_v29 }
  0x23   :  { %v747_v32 = vld [vmem:[#allocation2 + $0x8] sm:$0xff]  ;;  %v292_v33 = vrot.slane %v290_v28, 1  ;;  %v436_v35 = vrot.slane %v757_v30, 1  ;;  %v403_v38 = vld [vmem:[#allocation2 + $0x10] sm:$0x3]  ;;  %v282_v41 = vunpack.c.l.b16 %v255_v34 }
  0x24   :  { %v295_v37 = vshll.u32 %v747_v32, 16  ;;  %v430_v43 = vunpack.c.l.b16 %v403_v38  ;;  %v137_v44 = vld [vmem:[#allocation2 + $0x10] sm:$0x1]  ;;  %v299_v48 = vshrl.u32 %v747_v32, 16 }
  0x25   :  { %v293_v36 = vor.u32 %v292_v33, %v288_v27  ;;  %v437_v39 = vsel %vm434_vm0, %v435_v31, %v436_v35  ;;  %v285_v45 = vpack.c.b16 %v282_v41, %v282_v41  ;;  %v163_v46 = vunpack.c.l.b16 %v137_v44 }
  0x26   :  { %v297_v40 = vrot.slane %v295_v37, 1  ;;  %499 = vmatmul.bf16.vlgmr.msra.gmra.mxu2 %v437_v39  ;;  %v433_v47 = vpack.c.b16 %v430_v43, %v430_v43 }
  0x27   :  { %v303_v49 = vshll.u32 %v285_v45, 16  ;;  %v166_v50 = vpack.c.b16 %v163_v46, %v163_v46  ;;  %v307_v56 = vshrl.u32 %v285_v45, 16 }
  0x28   :  { %v298_v42 = vsel %vm286_vm1, %v293_v36, %v297_v40  ;;  %v438_v51 = vrot.slane %v433_v47, 1  ;;  %v301_v52 = vor.u32 %v299_v48, %v297_v40 }
  0x29   :  { %369 = vmatmul.bf16.vlgmr.msra.gmra.mxu1 %v298_v42  ;;  %v305_v53 = vrot.slane %v303_v49, 1 }
  0x2a   :  { %v439_v54 = vsel %vm434_vm0, %v436_v35, %v438_v51 }
  0x2b   :  { %v306_v55 = vsel %vm286_vm1, %v301_v52, %v305_v53  ;;  %v309_v57 = vor.u32 %v307_v56, %v305_v53 }
  0x32   :  { %236 = vmatmul.bf16.gmra.mxu3 %v166_v50 }
  0x36   :  { %504 = vmatmul.bf16.gmra.mxu2 %v439_v54 }
  0x39   :  { %374 = vmatmul.bf16.gmra.mxu1 %v306_v55 }
  0x46   :  { %509 = vmatmul.bf16.gmra.mxu2 %v438_v51 }
  0x49   :  { %379 = vmatmul.bf16.gmra.mxu1 %v309_v57 }
  0x9e   :  { %v227_v58 = vpop.f32.mrf.mxu0 }
  0xa5   :  { %v232_v60 = vpop.f32.mrf.mxu3 }
  0xa6   :  { %v370_v59 = vpop.f32.mrf.mxu1  ;;  %v229_v0 = vpop.f32.mrf.mxu0 }
  0xa7   :  { %v384_v61 = vadd.f32 %v370_v59, %v227_v58 }
  0xa9   :  { %v500_v62 = vpop.f32.mrf.mxu2 }
  0xaa   :  { %v514_v63 = vadd.f32 %v500_v62, %v384_v61 }
  0xac   :  { %526 = vst [vmem:[%s968_s4] sm:$0xff] %v514_v63  ;;  %v536_v23 = vmul.f32 %v514_v63, %v514_v63 }
  0xad   :  { %v234_v2 = vpop.f32.mrf.mxu3 }
  0xae   :  { %v372_v1 = vpop.f32.mrf.mxu1 }
  0xaf   :  { %v385_v3 = vadd.f32 %v372_v1, %v229_v0 }
  0xb1   :  { %v502_v4 = vpop.f32.mrf.mxu2 }
  0xb2   :  { %v515_v5 = vadd.f32 %v502_v4, %v385_v3 }
  0xb4   :  { %527 = vst [vmem:[%s968_s4 + $0x8] sm:$0xff] %v515_v5  ;;  %v537_v21 = vmul.f32 %v515_v5, %v515_v5  ;;  %v528_v25 = vadd.f32 %v515_v5, %v514_v63 }
  0xb5   :  { %v237_v7 = vpop.f32.mrf.mxu3 }
  0xb6   :  { %v375_v6 = vpop.f32.mrf.mxu1  ;;  %245 = vst [vmem:[#allocation3 + $0x20] sm:$0x3] %v237_v7  ;;  %v538_v26 = vadd.f32 %v537_v21, %v536_v23  ;;  %v529_v29 = vrot.slane %v528_v25, 4 }
  0xb7   :  { %v386_v8 = vadd.f32 %v375_v6, %v232_v60 }
  0xb8   :  { %v539_v30 = vrot.slane %v538_v26, 4  ;;  %v530_v31 = vadd.f32 %v529_v29, %v528_v25 }
  0xb9   :  { %v505_v9 = vpop.f32.mrf.mxu2 }
  0xba   :  { %v516_v10 = vadd.f32 %v505_v9, %v386_v8  ;;  %v540_v32 = vadd.f32 %v539_v30, %v538_v26  ;;  %v531_v37 = vrot.slane %v530_v31, 2 }
  0xbc   :  { %521 = vst [vmem:[#allocation3 + $0x10] sm:$0xff] %v516_v10  ;;  %v541_v38 = vrot.slane %v540_v32, 2  ;;  %v532_v43 = vadd.f32 %v531_v37, %v530_v31 }
  0xbd   :  { %v239_v12 = vpop.f32.mrf.mxu3  ;;  %v250_v16 = vld [vmem:[#allocation3 + $0x20] sm:$0x3] }
  0xbe   :  { %v377_v11 = vpop.f32.mrf.mxu1  ;;  %v542_v44 = vadd.f32 %v541_v38, %v540_v32  ;;  %v533_v49 = vrot.slane %v532_v43, 1 }
  0xbf   :  { %v387_v13 = vadd.f32 %v377_v11, %v234_v2 }
  0xc0   :  { %v543_v50 = vrot.slane %v542_v44, 1  ;;  %v534_v55 = vadd.f32 %v533_v49, %v532_v43 }
  0xc1   :  { %v507_v14 = vpop.f32.mrf.mxu2 }
  0xc2   :  { %v517_v15 = vadd.f32 %v507_v14, %v387_v13  ;;  %v544_v56 = vadd.f32 %v543_v50, %v542_v44 }
  0xc4   :  { %522 = vst [vmem:[#allocation3 + $0x18] sm:$0xff] %v517_v15 }
  0xc6   :  { %v380_v17 = vpop.f32.mrf.mxu1 }
  0xc7   :  { %v388_v18 = vadd.f32 %v380_v17, %v250_v16 }
  0xc9   :  { %393 = vst [vmem:[#allocation3 + $0x20] sm:$0x3] %v388_v18  ;;  %v510_v19 = vpop.f32.mrf.mxu2 }
  0xcb   :  { %v546_v20 = vld [vmem:[#allocation3 + $0x12] sm:$0xff] }
  0xcc   :  { %734 = vst [vmem:[%s968_s4 + $0x10] sm:$0xff] %v546_v20  ;;  %v559_v34 = vmul.f32 %v546_v20, %v546_v20 }
  0xce   :  { %v382_v22 = vpop.f32.mrf.mxu1 }
  0xd0   :  { %v398_v24 = vld [vmem:[#allocation3 + $0x20] sm:$0x3] }
  0xd1   :  { %v518_v27 = vadd.f32 %v510_v19, %v398_v24  ;;  %v512_v28 = vpop.f32.mrf.mxu2 }
  0xd3   :  { %523 = vst [vmem:[#allocation3 + $0x20] sm:$0x3] %v518_v27 }
  0xda   :  { %v547_v33 = vld [vmem:[#allocation3 + $0x1a] sm:$0xff] }
  0xdb   :  { %735 = vst [vmem:[%s968_s4 + $0x18] sm:$0xff] %v547_v33  ;;  %v551_v35 = vadd.f32 %v547_v33, %v546_v20  ;;  %v560_v36 = vmul.f32 %v547_v33, %v547_v33 }
  0xdd   :  { %v552_v39 = vrot.slane %v551_v35, 4  ;;  %v561_v40 = vadd.f32 %v560_v36, %v559_v34 }
  0xdf   :  { %v553_v41 = vadd.f32 %v552_v39, %v551_v35  ;;  %v562_v42 = vrot.slane %v561_v40, 4 }
  0xe1   :  { %v554_v45 = vrot.slane %v553_v41, 2  ;;  %v563_v46 = vadd.f32 %v562_v42, %v561_v40 }
  0xe3   :  { %v555_v47 = vadd.f32 %v554_v45, %v553_v41  ;;  %v564_v48 = vrot.slane %v563_v46, 2 }
  0xe5   :  { %v556_v51 = vrot.slane %v555_v47, 1  ;;  %v565_v52 = vadd.f32 %v564_v48, %v563_v46 }
  0xe7   :  { %v557_v53 = vadd.f32 %v556_v51, %v555_v47  ;;  %v566_v54 = vrot.slane %v565_v52, 1 }
  0xe9   :  { %v567_v57 = vadd.f32 %v566_v54, %v565_v52  ;;  %v558_v58 = vadd.f32 %v557_v53, %v534_v55 }
  0xeb   :  { %v568_v59 = vadd.f32 %v567_v57, %v544_v56 }
  0xed   :  { %v570_v60 = vsel %vm91_vm3, %v558_v58, %v568_v59 }
  0xee   :  { %v572_v61 = vsel %vm128_vm11, %v570_v60, 0.0 }
  0xef   :  { %573 = vst [vmem:[%s969_s5] sm:$0xff] %v572_v61 }

</bundles_post_ra>
